<compile_context>
chip_gen: v7x
topology: tpu7x:2x2x1
jax: 0.10.0
libtpu: 0.0.40
codegen_flags: <defaults>
</compile_context>

<pallas_src>
import jax
import jax.numpy as jnp
from jax import lax
from jax.experimental import pallas as pl
from jax.experimental.pallas import tpu as pltpu

LANE = 128  # one vreg lane tile


# ----------------------------- Fused Pallas kernel ---------------------------

def make_grunet_kernel(num_layers, T, H):
    """Build the fused kernel body (all GRU layers + final Linear + exp)."""
    G = LANE

    def kernel(*refs):
        x_ref = refs[0]
        out_ref = refs[-2]
        hseq_ref = refs[-1]                     # VMEM scratch: (T, H) last-layer h
        prefs = refs[1:-2]

        # ---- unpack parameters ------------------------------------------------
        w_in0_ref, bias0_ref, whh0_ref, bhn0_ref = prefs[0:4]
        fused_refs = []
        idx = 4
        for _ in range(num_layers - 1):
            fused_refs.append((prefs[idx], prefs[idx + 1]))
            idx += 2
        w_out_ref, b_out_ref = prefs[idx], prefs[idx + 1]

        # ---- layer 0: hoisted, time-parallel input projection -------------------
        # Lane-aligned gate tiles (biases b_ih and b_hh(r,z) pre-folded):
        #   [:,   0:128]  x W_ir^T + b_ir + b_hr
        #   [:, 128:256]  x W_iz^T + b_iz + b_hz
        #   [:, 256:384]  x W_in^T + b_in
        gi0 = (jnp.dot(x_ref[...], w_in0_ref[...],
                       preferred_element_type=jnp.float32)
               + bias0_ref[...])                                     # (T, 3*128)

        whh0 = whh0_ref[...]        # (H, 3*128)  packed [W_hr|W_hz|W_hn]^T (bf16)
        bhn0 = bhn0_ref[...]        # (1, H)      b_hn (kept apart for r * gh_n)
        fused = [(w[...], b[...]) for (w, b) in fused_refs]

        def blend(z, n, h_prev, first):
            # h_t = (1 - z) * n + z * h_{t-1};  h_{-1} == 0.
            if first:
                return (1.0 - z) * n
            return (1.0 - z) * n + z * h_prev

        h = [jnp.zeros((1, H), jnp.float32) for _ in range(num_layers)]

        # t-outer / layer-inner wavefront, fully unrolled: cell (l, t) only
        # depends on (l, t-1) and (l-1, t), so the LLO scheduler can overlap
        # layer l at step t with layer l-1 at step t+1.
        for t in range(T):
            first = (t == 0)

            # ----- layer 0: one packed recurrent matmul per step -----
            gi_t = gi0[t:t + 1, :]                                   # (1, 3*128)
            if first:
                # h == 0  =>  recurrent matmul is exactly zero.
                pre_rz = gi_t[:, 0:2 * G]
                gh_n = bhn0
            else:
                gh = jnp.dot(h[0].astype(whh0.dtype), whh0,
                             preferred_element_type=jnp.float32)     # (1, 3*128)
                pre_rz = gi_t[:, 0:2 * G] + gh[:, 0:2 * G]
                gh_n = gh[:, 2 * G:2 * G + H] + bhn0
            rz = jax.nn.sigmoid(pre_rz)
            r = rz[:, 0:H]                       # tile 0, lane offset 0 (free)
            z = rz[:, G:G + H]                   # tile 1, lane offset 0 (free)
            n = jnp.tanh(gi_t[:, 2 * G:2 * G + H] + r * gh_n)
            h[0] = blend(z, n, h[0], first)

            # ----- layers >= 1: single fused [h_below | h_prev] matmul -----
            for l in range(1, num_layers):
                w_f, b_f = fused[l - 1]
                inp = jnp.concatenate([h[l - 1], h[l]], axis=1)      # (1, 2H)
                g = (jnp.dot(inp.astype(w_f.dtype), w_f,
                             preferred_element_type=jnp.float32)
                     + b_f)                                          # (1, 4*128)
                rz = jax.nn.sigmoid(g[:, 0:2 * G])
                r = rz[:, 0:H]
                z = rz[:, G:G + H]
                n = jnp.tanh(g[:, 2 * G:2 * G + H] + r * g[:, 3 * G:3 * G + H])
                h[l] = blend(z, n, h[l], first)

            # Stash the last layer's h_t in VMEM scratch (no vreg concatenate).
            hseq_ref[t:t + 1, :] = h[num_layers - 1]

        # ---- final Linear + exp into a lane-dense (T, 128) slab ------------------
        h_seq = hseq_ref[...]                                        # (T, H)
        w_out = w_out_ref[...]
        y = (jnp.dot(h_seq.astype(w_out.dtype), w_out,
                     preferred_element_type=jnp.float32)
             + b_out_ref[...])                                       # (T, 128)
        out_ref[...] = jnp.exp(y)

    return kernel


# --------------------------------- Wrapper -----------------------------------

def grunet_forward(x, params, dim_output):
    """x: (T, 1, dim_input) float32 — time-major, batch == 1 (the reference
    forward's squeeze(1) implies a single sequence)."""
    assert x.shape[1] == 1, "squeeze(1) in the reference forward implies batch == 1"
    T = x.shape[0]
    H = params["H"]
    num_layers = params["num_layers"]

    flat = [x[:, 0, :].astype(jnp.float32)]
    flat.extend(params["layer0"])
    for w_f, b_f in params["fused"]:
        flat.extend((w_f, b_f))
    flat.append(params["w_out_p"])
    flat.append(params["b_out_p"])

    kernel = make_grunet_kernel(num_layers, T, H)
    # All weights, the input, and the inter-layer state stay resident in VMEM
    # for this single gridless invocation — tens of KiB, far below the scoped
    # VMEM limits on v5e/v6e (128 MiB physical) and v7x (64 MiB).  If H or T
    # grows, add a grid over T chunks and set vmem_limit_bytes explicitly.
    # TODO(synk): batch > 1 (or multiple sequences) would add a leading
    # 'parallel' grid axis to use the second TensorCore on v7x.
    out_padded = pl.pallas_call(
        kernel,
        out_shape=jax.ShapeDtypeStruct((T, LANE), jnp.float32),
        in_specs=[pl.BlockSpec(memory_space=pltpu.MemorySpace.VMEM)] * len(flat),
        out_specs=pl.BlockSpec(memory_space=pltpu.MemorySpace.VMEM),
        scratch_shapes=[pltpu.VMEM((T, H), jnp.float32)],
    )(*flat)
    return out_padded[:, :dim_output]


# ---------------------- Parameters (PyTorch layout + prep) -------------------

def init_params_torch_layout(key, dim_input, dim_recurrent, dim_hidden, dim_output=2):
    """Same shapes/init range as nn.GRU(num_layers=dim_recurrent) + nn.Linear."""
    k = 1.0 / float(dim_hidden) ** 0.5
    layers = []
    d_in = dim_input
    for _ in range(dim_recurrent):
        key, k1, k2, k3, k4 = jax.random.split(key, 5)
        w_ih = jax.random.uniform(k1, (3 * dim_hidden, d_in), jnp.float32, -k, k)
        w_hh = jax.random.uniform(k2, (3 * dim_hidden, dim_hidden), jnp.float32, -k, k)
        b_ih = jax.random.uniform(k3, (3 * dim_hidden,), jnp.float32, -k, k)
        b_hh = jax.random.uniform(k4, (3 * dim_hidden,), jnp.float32, -k, k)
        layers.append((w_ih, w_hh, b_ih, b_hh))
        d_in = dim_hidden
    key, k5, k6 = jax.random.split(key, 3)
    w_out = jax.random.uniform(k5, (dim_output, dim_hidden), jnp.float32, -k, k)
    b_out = jax.random.uniform(k6, (dim_output,), jnp.float32, -k, k)
    return {"gru": layers, "w_out": w_out, "b_out": b_out}


def prepare_params(tp, dim_hidden, dim_output, use_bf16=True):
    """Convert PyTorch-layout weights into the kernel's lane-aligned fused layout.

    use_bf16: cast the recurrent / fused / output weights to bf16 (single MXU
    pass, f32 accumulation).  The hoisted layer-0 input projection keeps f32
    weights (one tiny matmul, off the serial chain)."""
    H = dim_hidden
    G = LANE
    wdt = jnp.bfloat16 if use_bf16 else jnp.float32
    gru = tp["gru"]

    def gates(a):   # split leading 3H axis into (r, z, n)
        return a[0:H], a[H:2 * H], a[2 * H:3 * H]

    # ---- layer 0: hoisted input projection + packed W_hh ----
    w_ih, w_hh, b_ih, b_hh = gru[0]
    d_in = w_ih.shape[1]
    wir, wiz, win = gates(w_ih)
    whr, whz, whn = gates(w_hh)
    bir, biz, bin_ = gates(b_ih)
    bhr, bhz, bhn = gates(b_hh)

    w_in0 = jnp.zeros((d_in, 3 * G), jnp.float32)
    w_in0 = w_in0.at[:, 0 * G:0 * G + H].set(wir.T)
    w_in0 = w_in0.at[:, 1 * G:1 * G + H].set(wiz.T)
    w_in0 = w_in0.at[:, 2 * G:2 * G + H].set(win.T)

    bias0 = jnp.zeros((1, 3 * G), jnp.float32)
    bias0 = bias0.at[0, 0 * G:0 * G + H].set(bir + bhr)   # fold b_hr / b_hz
    bias0 = bias0.at[0, 1 * G:1 * G + H].set(biz + bhz)
    bias0 = bias0.at[0, 2 * G:2 * G + H].set(bin_)

    whh0 = jnp.zeros((H, 3 * G), jnp.float32)
    whh0 = whh0.at[:, 0 * G:0 * G + H].set(whr.T)
    whh0 = whh0.at[:, 1 * G:1 * G + H].set(whz.T)
    whh0 = whh0.at[:, 2 * G:2 * G + H].set(whn.T)

    bhn0 = bhn[None, :]                                   # (1, H), needed for r*gh_n

    layer0 = (w_in0, bias0, whh0.astype(wdt), bhn0)

    # ---- layers >= 1: fused [W_ih ; W_hh] with 4 lane-aligned output tiles ----
    #   tile 0: gi_r + gh_r   tile 1: gi_z + gh_z   tile 2: gi_n   tile 3: gh_n
    fused = []
    for (w_ih, w_hh, b_ih, b_hh) in gru[1:]:
        wir, wiz, win = gates(w_ih)
        whr, whz, whn = gates(w_hh)
        bir, biz, bin_ = gates(b_ih)
        bhr, bhz, bhn = gates(b_hh)

        w_f = jnp.zeros((2 * H, 4 * G), jnp.float32)
        w_f = w_f.at[0:H, 0 * G:0 * G + H].set(wir.T)        # rows 0:H  <- h_below
        w_f = w_f.at[0:H, 1 * G:1 * G + H].set(wiz.T)
        w_f = w_f.at[0:H, 2 * G:2 * G + H].set(win.T)
        w_f = w_f.at[H:2 * H, 0 * G:0 * G + H].set(whr.T)    # rows H:2H <- h_prev
        w_f = w_f.at[H:2 * H, 1 * G:1 * G + H].set(whz.T)
        w_f = w_f.at[H:2 * H, 3 * G:3 * G + H].set(whn.T)

        b_f = jnp.zeros((1, 4 * G), jnp.float32)
        b_f = b_f.at[0, 0 * G:0 * G + H].set(bir + bhr)
        b_f = b_f.at[0, 1 * G:1 * G + H].set(biz + bhz)
        b_f = b_f.at[0, 2 * G:2 * G + H].set(bin_)
        b_f = b_f.at[0, 3 * G:3 * G + H].set(bhn)
        fused.append((w_f.astype(wdt), b_f))

    # ---- final Linear, lane-dense (columns padded to 128) ----
    w_out_p = jnp.zeros((H, G), jnp.float32).at[:, 0:dim_output].set(tp["w_out"].T)
    b_out_p = jnp.zeros((1, G), jnp.float32).at[0, 0:dim_output].set(tp["b_out"])

    return {"layer0": layer0, "fused": fused,
            "w_out_p": w_out_p.astype(wdt), "b_out_p": b_out_p,
            "H": H, "num_layers": len(gru)}


# ---------------------------- Pure-JAX reference -----------------------------

def grunet_reference(x, tp):
    """Straightforward f32 GRU stack from the PyTorch-layout weights."""
    h_seq = x[:, 0, :].astype(jnp.float32)
    for (w_ih, w_hh, b_ih, b_hh) in tp["gru"]:
        H = w_hh.shape[1]

        def cell(h, x_t):
            gi = x_t @ w_ih.T + b_ih                                 # (3H,)
            gh = h @ w_hh.T + b_hh                                   # (3H,)
            r = jax.nn.sigmoid(gi[:H] + gh[:H])
            z = jax.nn.sigmoid(gi[H:2 * H] + gh[H:2 * H])
            n = jnp.tanh(gi[2 * H:] + r * gh[2 * H:])
            h_new = (1.0 - z) * n + z * h
            return h_new, h_new

        _, h_seq = lax.scan(cell, jnp.zeros((H,), jnp.float32), h_seq)
    return jnp.exp(h_seq @ tp["w_out"].T + tp["b_out"])


# --------------------------------- Main ---------------------------------------

if __name__ == "__main__":
    dim_input, dim_recurrent, dim_hidden, dim_output = 4, 2, 32, 2
    seq_len, batch = 8, 1   # squeeze(1) in the reference forward implies batch == 1

    key = jax.random.PRNGKey(0)
    key, pkey, xkey = jax.random.split(key, 3)
    torch_params = init_params_torch_layout(
        pkey, dim_input, dim_recurrent, dim_hidden, dim_output)
    x = jax.random.normal(xkey, (seq_len, batch, dim_input), jnp.float32)

    ref = jax.block_until_ready(grunet_reference(x, torch_params))

    # 1) Structural/exactness check: f32 weights in the kernel vs f32 reference.
    params_f32 = prepare_params(torch_params, dim_hidden, dim_output, use_bf16=False)
    out_f32 = jax.block_until_ready(grunet_forward(x, params_f32, dim_output))
    assert out_f32.shape == (seq_len, dim_output), out_f32.shape
    assert jnp.allclose(out_f32, ref, rtol=1e-3, atol=1e-5), (out_f32, ref)

    # 2) Performance config: bf16 MXU operands (f32 accumulation).  The f32
    #    reference comparison needs a relaxed tolerance for bf16 rounding.
    params_bf16 = prepare_params(torch_params, dim_hidden, dim_output, use_bf16=True)
    out = jax.block_until_ready(grunet_forward(x, params_bf16, dim_output))
    assert out.shape == (seq_len, dim_output), out.shape
    assert jnp.allclose(out, ref, rtol=5e-2, atol=5e-2), (out, ref)

    print("KERNEL_OK")
</pallas_src>

<mosaic_0001>
module attributes {stable_mosaic.version = 11 : i64} {
  func.func @kernel(%arg0: memref<8x4xf32, #tpu.memory_space<vmem>>, %arg1: memref<4x384xf32, #tpu.memory_space<vmem>>, %arg2: memref<1x384xf32, #tpu.memory_space<vmem>>, %arg3: memref<32x384xf32, #tpu.memory_space<vmem>>, %arg4: memref<1x32xf32, #tpu.memory_space<vmem>>, %arg5: memref<64x512xf32, #tpu.memory_space<vmem>>, %arg6: memref<1x512xf32, #tpu.memory_space<vmem>>, %arg7: memref<32x128xf32, #tpu.memory_space<vmem>>, %arg8: memref<1x128xf32, #tpu.memory_space<vmem>>, %arg9: memref<8x128xf32, #tpu.memory_space<vmem>>, %arg10: memref<8x32xf32, #tpu.memory_space<vmem>>) attributes {dimension_semantics = [], scalar_prefetch = 0 : i64, scratch_operands = 1 : i64, tpu.core_type = #tpu.core_type<tc>} {
    %c0 = arith.constant 0 : index
    %c0_0 = arith.constant 0 : index
    %0 = vector.load %arg0[%c0, %c0_0] : memref<8x4xf32, #tpu.memory_space<vmem>>, vector<8x4xf32>
    %c0_1 = arith.constant 0 : index
    %c0_2 = arith.constant 0 : index
    %1 = vector.load %arg1[%c0_1, %c0_2] : memref<4x384xf32, #tpu.memory_space<vmem>>, vector<4x384xf32>
    %cst = arith.constant dense<0.000000e+00> : vector<8x384xf32>
    %2 = tpu.matmul %0, %1, %cst {dimension_numbers = #tpu.dot_dimension_numbers<[1], [0], [0], [1], [0, 0, 1, 1], [], []>} : vector<8x4xf32>, vector<4x384xf32>, vector<8x384xf32> -> vector<8x384xf32>
    %c0_3 = arith.constant 0 : index
    %c0_4 = arith.constant 0 : index
    %3 = vector.load %arg2[%c0_3, %c0_4] : memref<1x384xf32, #tpu.memory_space<vmem>>, vector<1x384xf32>
    %4 = vector.broadcast %3 : vector<1x384xf32> to vector<8x384xf32>
    %5 = arith.addf %2, %4 : vector<8x384xf32>
    %c0_5 = arith.constant 0 : index
    %c0_6 = arith.constant 0 : index
    %6 = vector.load %arg3[%c0_5, %c0_6] : memref<32x384xf32, #tpu.memory_space<vmem>>, vector<32x384xf32>
    %c0_7 = arith.constant 0 : index
    %c0_8 = arith.constant 0 : index
    %7 = vector.load %arg4[%c0_7, %c0_8] : memref<1x32xf32, #tpu.memory_space<vmem>>, vector<1x32xf32>
    %c0_9 = arith.constant 0 : index
    %c0_10 = arith.constant 0 : index
    %8 = vector.load %arg5[%c0_9, %c0_10] : memref<64x512xf32, #tpu.memory_space<vmem>>, vector<64x512xf32>
    %c0_11 = arith.constant 0 : index
    %c0_12 = arith.constant 0 : index
    %9 = vector.load %arg6[%c0_11, %c0_12] : memref<1x512xf32, #tpu.memory_space<vmem>>, vector<1x512xf32>
    %cst_13 = arith.constant 0.000000e+00 : f32
    %10 = vector.broadcast %cst_13 : f32 to vector<1x32xf32>
    %11 = vector.extract_strided_slice %5 {offsets = [0, 0], sizes = [1, 384], strides = [1, 1]} : vector<8x384xf32> to vector<1x384xf32>
    %12 = vector.extract_strided_slice %11 {offsets = [0, 0], sizes = [1, 256], strides = [1, 1]} : vector<1x384xf32> to vector<1x256xf32>
    %13 = arith.negf %12 : vector<1x256xf32>
    %14 = math.exp %13 : vector<1x256xf32>
    %cst_14 = arith.constant 1.000000e+00 : f32
    %15 = vector.broadcast %cst_14 : f32 to vector<1x256xf32>
    %16 = arith.addf %15, %14 : vector<1x256xf32>
    %17 = arith.divf %15, %16 : vector<1x256xf32>
    %18 = vector.extract_strided_slice %17 {offsets = [0, 0], sizes = [1, 32], strides = [1, 1]} : vector<1x256xf32> to vector<1x32xf32>
    %19 = vector.extract_strided_slice %17 {offsets = [0, 128], sizes = [1, 32], strides = [1, 1]} : vector<1x256xf32> to vector<1x32xf32>
    %20 = vector.extract_strided_slice %11 {offsets = [0, 256], sizes = [1, 32], strides = [1, 1]} : vector<1x384xf32> to vector<1x32xf32>
    %21 = arith.mulf %18, %7 : vector<1x32xf32>
    %22 = arith.addf %20, %21 : vector<1x32xf32>
    %23 = math.tanh %22 : vector<1x32xf32>
    %cst_15 = arith.constant 1.000000e+00 : f32
    %24 = vector.broadcast %cst_15 : f32 to vector<1x32xf32>
    %25 = arith.subf %24, %19 : vector<1x32xf32>
    %26 = arith.mulf %25, %23 : vector<1x32xf32>
    %27 = tpu.concatenate %26, %10 in 1 : vector<1x32xf32>, vector<1x32xf32> -> vector<1x64xf32>
    %cst_16 = arith.constant dense<0.000000e+00> : vector<1x512xf32>
    %28 = tpu.matmul %27, %8, %cst_16 {dimension_numbers = #tpu.dot_dimension_numbers<[1], [0], [0], [1], [0, 0, 1, 1], [], []>} : vector<1x64xf32>, vector<64x512xf32>, vector<1x512xf32> -> vector<1x512xf32>
    %29 = arith.addf %28, %9 : vector<1x512xf32>
    %30 = vector.extract_strided_slice %29 {offsets = [0, 0], sizes = [1, 256], strides = [1, 1]} : vector<1x512xf32> to vector<1x256xf32>
    %31 = arith.negf %30 : vector<1x256xf32>
    %32 = math.exp %31 : vector<1x256xf32>
    %cst_17 = arith.constant 1.000000e+00 : f32
    %33 = vector.broadcast %cst_17 : f32 to vector<1x256xf32>
    %34 = arith.addf %33, %32 : vector<1x256xf32>
    %35 = arith.divf %33, %34 : vector<1x256xf32>
    %36 = vector.extract_strided_slice %35 {offsets = [0, 0], sizes = [1, 32], strides = [1, 1]} : vector<1x256xf32> to vector<1x32xf32>
    %37 = vector.extract_strided_slice %35 {offsets = [0, 128], sizes = [1, 32], strides = [1, 1]} : vector<1x256xf32> to vector<1x32xf32>
    %38 = vector.extract_strided_slice %29 {offsets = [0, 256], sizes = [1, 32], strides = [1, 1]} : vector<1x512xf32> to vector<1x32xf32>
    %39 = vector.extract_strided_slice %29 {offsets = [0, 384], sizes = [1, 32], strides = [1, 1]} : vector<1x512xf32> to vector<1x32xf32>
    %40 = arith.mulf %36, %39 : vector<1x32xf32>
    %41 = arith.addf %38, %40 : vector<1x32xf32>
    %42 = math.tanh %41 : vector<1x32xf32>
    %cst_18 = arith.constant 1.000000e+00 : f32
    %43 = vector.broadcast %cst_18 : f32 to vector<1x32xf32>
    %44 = arith.subf %43, %37 : vector<1x32xf32>
    %45 = arith.mulf %44, %42 : vector<1x32xf32>
    %c0_19 = arith.constant 0 : index
    %c0_20 = arith.constant 0 : index
    %46 = vector.load %arg10[%c0_19, %c0_20] : memref<8x32xf32, #tpu.memory_space<vmem>>, vector<1x32xf32>
    tpu.vector_store %arg10[%c0_19, %c0_20], %45 {strides = array<i32>} : memref<8x32xf32, #tpu.memory_space<vmem>>, vector<1x32xf32>,
    %47 = vector.extract_strided_slice %5 {offsets = [1, 0], sizes = [1, 384], strides = [1, 1]} : vector<8x384xf32> to vector<1x384xf32>
    %cst_21 = arith.constant dense<0.000000e+00> : vector<1x384xf32>
    %48 = tpu.matmul %26, %6, %cst_21 {dimension_numbers = #tpu.dot_dimension_numbers<[1], [0], [0], [1], [0, 0, 1, 1], [], []>} : vector<1x32xf32>, vector<32x384xf32>, vector<1x384xf32> -> vector<1x384xf32>
    %49 = vector.extract_strided_slice %47 {offsets = [0, 0], sizes = [1, 256], strides = [1, 1]} : vector<1x384xf32> to vector<1x256xf32>
    %50 = vector.extract_strided_slice %48 {offsets = [0, 0], sizes = [1, 256], strides = [1, 1]} : vector<1x384xf32> to vector<1x256xf32>
    %51 = arith.addf %49, %50 : vector<1x256xf32>
    %52 = vector.extract_strided_slice %48 {offsets = [0, 256], sizes = [1, 32], strides = [1, 1]} : vector<1x384xf32> to vector<1x32xf32>
    %53 = arith.addf %52, %7 : vector<1x32xf32>
    %54 = arith.negf %51 : vector<1x256xf32>
    %55 = math.exp %54 : vector<1x256xf32>
    %cst_22 = arith.constant 1.000000e+00 : f32
    %56 = vector.broadcast %cst_22 : f32 to vector<1x256xf32>
    %57 = arith.addf %56, %55 : vector<1x256xf32>
    %58 = arith.divf %56, %57 : vector<1x256xf32>
    %59 = vector.extract_strided_slice %58 {offsets = [0, 0], sizes = [1, 32], strides = [1, 1]} : vector<1x256xf32> to vector<1x32xf32>
    %60 = vector.extract_strided_slice %58 {offsets = [0, 128], sizes = [1, 32], strides = [1, 1]} : vector<1x256xf32> to vector<1x32xf32>
    %61 = vector.extract_strided_slice %47 {offsets = [0, 256], sizes = [1, 32], strides = [1, 1]} : vector<1x384xf32> to vector<1x32xf32>
    %62 = arith.mulf %59, %53 : vector<1x32xf32>
    %63 = arith.addf %61, %62 : vector<1x32xf32>
    %64 = math.tanh %63 : vector<1x32xf32>
    %cst_23 = arith.constant 1.000000e+00 : f32
    %65 = vector.broadcast %cst_23 : f32 to vector<1x32xf32>
    %66 = arith.subf %65, %60 : vector<1x32xf32>
    %67 = arith.mulf %66, %64 : vector<1x32xf32>
    %68 = arith.mulf %60, %26 : vector<1x32xf32>
    %69 = arith.addf %67, %68 : vector<1x32xf32>
    %70 = tpu.concatenate %69, %45 in 1 : vector<1x32xf32>, vector<1x32xf32> -> vector<1x64xf32>
    %cst_24 = arith.constant dense<0.000000e+00> : vector<1x512xf32>
    %71 = tpu.matmul %70, %8, %cst_24 {dimension_numbers = #tpu.dot_dimension_numbers<[1], [0], [0], [1], [0, 0, 1, 1], [], []>} : vector<1x64xf32>, vector<64x512xf32>, vector<1x512xf32> -> vector<1x512xf32>
    %72 = arith.addf %71, %9 : vector<1x512xf32>
    %73 = vector.extract_strided_slice %72 {offsets = [0, 0], sizes = [1, 256], strides = [1, 1]} : vector<1x512xf32> to vector<1x256xf32>
    %74 = arith.negf %73 : vector<1x256xf32>
    %75 = math.exp %74 : vector<1x256xf32>
    %cst_25 = arith.constant 1.000000e+00 : f32
    %76 = vector.broadcast %cst_25 : f32 to vector<1x256xf32>
    %77 = arith.addf %76, %75 : vector<1x256xf32>
    %78 = arith.divf %76, %77 : vector<1x256xf32>
    %79 = vector.extract_strided_slice %78 {offsets = [0, 0], sizes = [1, 32], strides = [1, 1]} : vector<1x256xf32> to vector<1x32xf32>
    %80 = vector.extract_strided_slice %78 {offsets = [0, 128], sizes = [1, 32], strides = [1, 1]} : vector<1x256xf32> to vector<1x32xf32>
    %81 = vector.extract_strided_slice %72 {offsets = [0, 256], sizes = [1, 32], strides = [1, 1]} : vector<1x512xf32> to vector<1x32xf32>
    %82 = vector.extract_strided_slice %72 {offsets = [0, 384], sizes = [1, 32], strides = [1, 1]} : vector<1x512xf32> to vector<1x32xf32>
    %83 = arith.mulf %79, %82 : vector<1x32xf32>
    %84 = arith.addf %81, %83 : vector<1x32xf32>
    %85 = math.tanh %84 : vector<1x32xf32>
    %cst_26 = arith.constant 1.000000e+00 : f32
    %86 = vector.broadcast %cst_26 : f32 to vector<1x32xf32>
    %87 = arith.subf %86, %80 : vector<1x32xf32>
    %88 = arith.mulf %87, %85 : vector<1x32xf32>
    %89 = arith.mulf %80, %45 : vector<1x32xf32>
    %90 = arith.addf %88, %89 : vector<1x32xf32>
    %c1 = arith.constant 1 : index
    %c0_27 = arith.constant 0 : index
    %91 = vector.load %arg10[%c1, %c0_27] : memref<8x32xf32, #tpu.memory_space<vmem>>, vector<1x32xf32>
    tpu.vector_store %arg10[%c1, %c0_27], %90 {strides = array<i32>} : memref<8x32xf32, #tpu.memory_space<vmem>>, vector<1x32xf32>,
    %92 = vector.extract_strided_slice %5 {offsets = [2, 0], sizes = [1, 384], strides = [1, 1]} : vector<8x384xf32> to vector<1x384xf32>
    %cst_28 = arith.constant dense<0.000000e+00> : vector<1x384xf32>
    %93 = tpu.matmul %69, %6, %cst_28 {dimension_numbers = #tpu.dot_dimension_numbers<[1], [0], [0], [1], [0, 0, 1, 1], [], []>} : vector<1x32xf32>, vector<32x384xf32>, vector<1x384xf32> -> vector<1x384xf32>
    %94 = vector.extract_strided_slice %92 {offsets = [0, 0], sizes = [1, 256], strides = [1, 1]} : vector<1x384xf32> to vector<1x256xf32>
    %95 = vector.extract_strided_slice %93 {offsets = [0, 0], sizes = [1, 256], strides = [1, 1]} : vector<1x384xf32> to vector<1x256xf32>
    %96 = arith.addf %94, %95 : vector<1x256xf32>
    %97 = vector.extract_strided_slice %93 {offsets = [0, 256], sizes = [1, 32], strides = [1, 1]} : vector<1x384xf32> to vector<1x32xf32>
    %98 = arith.addf %97, %7 : vector<1x32xf32>
    %99 = arith.negf %96 : vector<1x256xf32>
    %100 = math.exp %99 : vector<1x256xf32>
    %cst_29 = arith.constant 1.000000e+00 : f32
    %101 = vector.broadcast %cst_29 : f32 to vector<1x256xf32>
    %102 = arith.addf %101, %100 : vector<1x256xf32>
    %103 = arith.divf %101, %102 : vector<1x256xf32>
    %104 = vector.extract_strided_slice %103 {offsets = [0, 0], sizes = [1, 32], strides = [1, 1]} : vector<1x256xf32> to vector<1x32xf32>
    %105 = vector.extract_strided_slice %103 {offsets = [0, 128], sizes = [1, 32], strides = [1, 1]} : vector<1x256xf32> to vector<1x32xf32>
    %106 = vector.extract_strided_slice %92 {offsets = [0, 256], sizes = [1, 32], strides = [1, 1]} : vector<1x384xf32> to vector<1x32xf32>
    %107 = arith.mulf %104, %98 : vector<1x32xf32>
    %108 = arith.addf %106, %107 : vector<1x32xf32>
    %109 = math.tanh %108 : vector<1x32xf32>
    %cst_30 = arith.constant 1.000000e+00 : f32
    %110 = vector.broadcast %cst_30 : f32 to vector<1x32xf32>
    %111 = arith.subf %110, %105 : vector<1x32xf32>
    %112 = arith.mulf %111, %109 : vector<1x32xf32>
    %113 = arith.mulf %105, %69 : vector<1x32xf32>
    %114 = arith.addf %112, %113 : vector<1x32xf32>
    %115 = tpu.concatenate %114, %90 in 1 : vector<1x32xf32>, vector<1x32xf32> -> vector<1x64xf32>
    %cst_31 = arith.constant dense<0.000000e+00> : vector<1x512xf32>
    %116 = tpu.matmul %115, %8, %cst_31 {dimension_numbers = #tpu.dot_dimension_numbers<[1], [0], [0], [1], [0, 0, 1, 1], [], []>} : vector<1x64xf32>, vector<64x512xf32>, vector<1x512xf32> -> vector<1x512xf32>
    %117 = arith.addf %116, %9 : vector<1x512xf32>
    %118 = vector.extract_strided_slice %117 {offsets = [0, 0], sizes = [1, 256], strides = [1, 1]} : vector<1x512xf32> to vector<1x256xf32>
    %119 = arith.negf %118 : vector<1x256xf32>
    %120 = math.exp %119 : vector<1x256xf32>
    %cst_32 = arith.constant 1.000000e+00 : f32
    %121 = vector.broadcast %cst_32 : f32 to vector<1x256xf32>
    %122 = arith.addf %121, %120 : vector<1x256xf32>
    %123 = arith.divf %121, %122 : vector<1x256xf32>
    %124 = vector.extract_strided_slice %123 {offsets = [0, 0], sizes = [1, 32], strides = [1, 1]} : vector<1x256xf32> to vector<1x32xf32>
    %125 = vector.extract_strided_slice %123 {offsets = [0, 128], sizes = [1, 32], strides = [1, 1]} : vector<1x256xf32> to vector<1x32xf32>
    %126 = vector.extract_strided_slice %117 {offsets = [0, 256], sizes = [1, 32], strides = [1, 1]} : vector<1x512xf32> to vector<1x32xf32>
    %127 = vector.extract_strided_slice %117 {offsets = [0, 384], sizes = [1, 32], strides = [1, 1]} : vector<1x512xf32> to vector<1x32xf32>
    %128 = arith.mulf %124, %127 : vector<1x32xf32>
    %129 = arith.addf %126, %128 : vector<1x32xf32>
    %130 = math.tanh %129 : vector<1x32xf32>
    %cst_33 = arith.constant 1.000000e+00 : f32
    %131 = vector.broadcast %cst_33 : f32 to vector<1x32xf32>
    %132 = arith.subf %131, %125 : vector<1x32xf32>
    %133 = arith.mulf %132, %130 : vector<1x32xf32>
    %134 = arith.mulf %125, %90 : vector<1x32xf32>
    %135 = arith.addf %133, %134 : vector<1x32xf32>
    %c2 = arith.constant 2 : index
    %c0_34 = arith.constant 0 : index
    %136 = vector.load %arg10[%c2, %c0_34] : memref<8x32xf32, #tpu.memory_space<vmem>>, vector<1x32xf32>
    tpu.vector_store %arg10[%c2, %c0_34], %135 {strides = array<i32>} : memref<8x32xf32, #tpu.memory_space<vmem>>, vector<1x32xf32>,
    %137 = vector.extract_strided_slice %5 {offsets = [3, 0], sizes = [1, 384], strides = [1, 1]} : vector<8x384xf32> to vector<1x384xf32>
    %cst_35 = arith.constant dense<0.000000e+00> : vector<1x384xf32>
    %138 = tpu.matmul %114, %6, %cst_35 {dimension_numbers = #tpu.dot_dimension_numbers<[1], [0], [0], [1], [0, 0, 1, 1], [], []>} : vector<1x32xf32>, vector<32x384xf32>, vector<1x384xf32> -> vector<1x384xf32>
    %139 = vector.extract_strided_slice %137 {offsets = [0, 0], sizes = [1, 256], strides = [1, 1]} : vector<1x384xf32> to vector<1x256xf32>
    %140 = vector.extract_strided_slice %138 {offsets = [0, 0], sizes = [1, 256], strides = [1, 1]} : vector<1x384xf32> to vector<1x256xf32>
    %141 = arith.addf %139, %140 : vector<1x256xf32>
    %142 = vector.extract_strided_slice %138 {offsets = [0, 256], sizes = [1, 32], strides = [1, 1]} : vector<1x384xf32> to vector<1x32xf32>
    %143 = arith.addf %142, %7 : vector<1x32xf32>
    %144 = arith.negf %141 : vector<1x256xf32>
    %145 = math.exp %144 : vector<1x256xf32>
    %cst_36 = arith.constant 1.000000e+00 : f32
    %146 = vector.broadcast %cst_36 : f32 to vector<1x256xf32>
    %147 = arith.addf %146, %145 : vector<1x256xf32>
    %148 = arith.divf %146, %147 : vector<1x256xf32>
    %149 = vector.extract_strided_slice %148 {offsets = [0, 0], sizes = [1, 32], strides = [1, 1]} : vector<1x256xf32> to vector<1x32xf32>
    %150 = vector.extract_strided_slice %148 {offsets = [0, 128], sizes = [1, 32], strides = [1, 1]} : vector<1x256xf32> to vector<1x32xf32>
    %151 = vector.extract_strided_slice %137 {offsets = [0, 256], sizes = [1, 32], strides = [1, 1]} : vector<1x384xf32> to vector<1x32xf32>
    %152 = arith.mulf %149, %143 : vector<1x32xf32>
    %153 = arith.addf %151, %152 : vector<1x32xf32>
    %154 = math.tanh %153 : vector<1x32xf32>
    %cst_37 = arith.constant 1.000000e+00 : f32
    %155 = vector.broadcast %cst_37 : f32 to vector<1x32xf32>
    %156 = arith.subf %155, %150 : vector<1x32xf32>
    %157 = arith.mulf %156, %154 : vector<1x32xf32>
    %158 = arith.mulf %150, %114 : vector<1x32xf32>
    %159 = arith.addf %157, %158 : vector<1x32xf32>
    %160 = tpu.concatenate %159, %135 in 1 : vector<1x32xf32>, vector<1x32xf32> -> vector<1x64xf32>
    %cst_38 = arith.constant dense<0.000000e+00> : vector<1x512xf32>
    %161 = tpu.matmul %160, %8, %cst_38 {dimension_numbers = #tpu.dot_dimension_numbers<[1], [0], [0], [1], [0, 0, 1, 1], [], []>} : vector<1x64xf32>, vector<64x512xf32>, vector<1x512xf32> -> vector<1x512xf32>
    %162 = arith.addf %161, %9 : vector<1x512xf32>
    %163 = vector.extract_strided_slice %162 {offsets = [0, 0], sizes = [1, 256], strides = [1, 1]} : vector<1x512xf32> to vector<1x256xf32>
    %164 = arith.negf %163 : vector<1x256xf32>
    %165 = math.exp %164 : vector<1x256xf32>
    %cst_39 = arith.constant 1.000000e+00 : f32
    %166 = vector.broadcast %cst_39 : f32 to vector<1x256xf32>
    %167 = arith.addf %166, %165 : vector<1x256xf32>
    %168 = arith.divf %166, %167 : vector<1x256xf32>
    %169 = vector.extract_strided_slice %168 {offsets = [0, 0], sizes = [1, 32], strides = [1, 1]} : vector<1x256xf32> to vector<1x32xf32>
    %170 = vector.extract_strided_slice %168 {offsets = [0, 128], sizes = [1, 32], strides = [1, 1]} : vector<1x256xf32> to vector<1x32xf32>
    %171 = vector.extract_strided_slice %162 {offsets = [0, 256], sizes = [1, 32], strides = [1, 1]} : vector<1x512xf32> to vector<1x32xf32>
    %172 = vector.extract_strided_slice %162 {offsets = [0, 384], sizes = [1, 32], strides = [1, 1]} : vector<1x512xf32> to vector<1x32xf32>
    %173 = arith.mulf %169, %172 : vector<1x32xf32>
    %174 = arith.addf %171, %173 : vector<1x32xf32>
    %175 = math.tanh %174 : vector<1x32xf32>
    %cst_40 = arith.constant 1.000000e+00 : f32
    %176 = vector.broadcast %cst_40 : f32 to vector<1x32xf32>
    %177 = arith.subf %176, %170 : vector<1x32xf32>
    %178 = arith.mulf %177, %175 : vector<1x32xf32>
    %179 = arith.mulf %170, %135 : vector<1x32xf32>
    %180 = arith.addf %178, %179 : vector<1x32xf32>
    %c3 = arith.constant 3 : index
    %c0_41 = arith.constant 0 : index
    %181 = vector.load %arg10[%c3, %c0_41] : memref<8x32xf32, #tpu.memory_space<vmem>>, vector<1x32xf32>
    tpu.vector_store %arg10[%c3, %c0_41], %180 {strides = array<i32>} : memref<8x32xf32, #tpu.memory_space<vmem>>, vector<1x32xf32>,
    %182 = vector.extract_strided_slice %5 {offsets = [4, 0], sizes = [1, 384], strides = [1, 1]} : vector<8x384xf32> to vector<1x384xf32>
    %cst_42 = arith.constant dense<0.000000e+00> : vector<1x384xf32>
    %183 = tpu.matmul %159, %6, %cst_42 {dimension_numbers = #tpu.dot_dimension_numbers<[1], [0], [0], [1], [0, 0, 1, 1], [], []>} : vector<1x32xf32>, vector<32x384xf32>, vector<1x384xf32> -> vector<1x384xf32>
    %184 = vector.extract_strided_slice %182 {offsets = [0, 0], sizes = [1, 256], strides = [1, 1]} : vector<1x384xf32> to vector<1x256xf32>
    %185 = vector.extract_strided_slice %183 {offsets = [0, 0], sizes = [1, 256], strides = [1, 1]} : vector<1x384xf32> to vector<1x256xf32>
    %186 = arith.addf %184, %185 : vector<1x256xf32>
    %187 = vector.extract_strided_slice %183 {offsets = [0, 256], sizes = [1, 32], strides = [1, 1]} : vector<1x384xf32> to vector<1x32xf32>
    %188 = arith.addf %187, %7 : vector<1x32xf32>
    %189 = arith.negf %186 : vector<1x256xf32>
    %190 = math.exp %189 : vector<1x256xf32>
    %cst_43 = arith.constant 1.000000e+00 : f32
    %191 = vector.broadcast %cst_43 : f32 to vector<1x256xf32>
    %192 = arith.addf %191, %190 : vector<1x256xf32>
    %193 = arith.divf %191, %192 : vector<1x256xf32>
    %194 = vector.extract_strided_slice %193 {offsets = [0, 0], sizes = [1, 32], strides = [1, 1]} : vector<1x256xf32> to vector<1x32xf32>
    %195 = vector.extract_strided_slice %193 {offsets = [0, 128], sizes = [1, 32], strides = [1, 1]} : vector<1x256xf32> to vector<1x32xf32>
    %196 = vector.extract_strided_slice %182 {offsets = [0, 256], sizes = [1, 32], strides = [1, 1]} : vector<1x384xf32> to vector<1x32xf32>
    %197 = arith.mulf %194, %188 : vector<1x32xf32>
    %198 = arith.addf %196, %197 : vector<1x32xf32>
    %199 = math.tanh %198 : vector<1x32xf32>
    %cst_44 = arith.constant 1.000000e+00 : f32
    %200 = vector.broadcast %cst_44 : f32 to vector<1x32xf32>
    %201 = arith.subf %200, %195 : vector<1x32xf32>
    %202 = arith.mulf %201, %199 : vector<1x32xf32>
    %203 = arith.mulf %195, %159 : vector<1x32xf32>
    %204 = arith.addf %202, %203 : vector<1x32xf32>
    %205 = tpu.concatenate %204, %180 in 1 : vector<1x32xf32>, vector<1x32xf32> -> vector<1x64xf32>
    %cst_45 = arith.constant dense<0.000000e+00> : vector<1x512xf32>
    %206 = tpu.matmul %205, %8, %cst_45 {dimension_numbers = #tpu.dot_dimension_numbers<[1], [0], [0], [1], [0, 0, 1, 1], [], []>} : vector<1x64xf32>, vector<64x512xf32>, vector<1x512xf32> -> vector<1x512xf32>
    %207 = arith.addf %206, %9 : vector<1x512xf32>
    %208 = vector.extract_strided_slice %207 {offsets = [0, 0], sizes = [1, 256], strides = [1, 1]} : vector<1x512xf32> to vector<1x256xf32>
    %209 = arith.negf %208 : vector<1x256xf32>
    %210 = math.exp %209 : vector<1x256xf32>
    %cst_46 = arith.constant 1.000000e+00 : f32
    %211 = vector.broadcast %cst_46 : f32 to vector<1x256xf32>
    %212 = arith.addf %211, %210 : vector<1x256xf32>
    %213 = arith.divf %211, %212 : vector<1x256xf32>
    %214 = vector.extract_strided_slice %213 {offsets = [0, 0], sizes = [1, 32], strides = [1, 1]} : vector<1x256xf32> to vector<1x32xf32>
    %215 = vector.extract_strided_slice %213 {offsets = [0, 128], sizes = [1, 32], strides = [1, 1]} : vector<1x256xf32> to vector<1x32xf32>
    %216 = vector.extract_strided_slice %207 {offsets = [0, 256], sizes = [1, 32], strides = [1, 1]} : vector<1x512xf32> to vector<1x32xf32>
    %217 = vector.extract_strided_slice %207 {offsets = [0, 384], sizes = [1, 32], strides = [1, 1]} : vector<1x512xf32> to vector<1x32xf32>
    %218 = arith.mulf %214, %217 : vector<1x32xf32>
    %219 = arith.addf %216, %218 : vector<1x32xf32>
    %220 = math.tanh %219 : vector<1x32xf32>
    %cst_47 = arith.constant 1.000000e+00 : f32
    %221 = vector.broadcast %cst_47 : f32 to vector<1x32xf32>
    %222 = arith.subf %221, %215 : vector<1x32xf32>
    %223 = arith.mulf %222, %220 : vector<1x32xf32>
    %224 = arith.mulf %215, %180 : vector<1x32xf32>
    %225 = arith.addf %223, %224 : vector<1x32xf32>
    %c4 = arith.constant 4 : index
    %c0_48 = arith.constant 0 : index
    %226 = vector.load %arg10[%c4, %c0_48] : memref<8x32xf32, #tpu.memory_space<vmem>>, vector<1x32xf32>
    tpu.vector_store %arg10[%c4, %c0_48], %225 {strides = array<i32>} : memref<8x32xf32, #tpu.memory_space<vmem>>, vector<1x32xf32>,
    %227 = vector.extract_strided_slice %5 {offsets = [5, 0], sizes = [1, 384], strides = [1, 1]} : vector<8x384xf32> to vector<1x384xf32>
    %cst_49 = arith.constant dense<0.000000e+00> : vector<1x384xf32>
    %228 = tpu.matmul %204, %6, %cst_49 {dimension_numbers = #tpu.dot_dimension_numbers<[1], [0], [0], [1], [0, 0, 1, 1], [], []>} : vector<1x32xf32>, vector<32x384xf32>, vector<1x384xf32> -> vector<1x384xf32>
    %229 = vector.extract_strided_slice %227 {offsets = [0, 0], sizes = [1, 256], strides = [1, 1]} : vector<1x384xf32> to vector<1x256xf32>
    %230 = vector.extract_strided_slice %228 {offsets = [0, 0], sizes = [1, 256], strides = [1, 1]} : vector<1x384xf32> to vector<1x256xf32>
    %231 = arith.addf %229, %230 : vector<1x256xf32>
    %232 = vector.extract_strided_slice %228 {offsets = [0, 256], sizes = [1, 32], strides = [1, 1]} : vector<1x384xf32> to vector<1x32xf32>
    %233 = arith.addf %232, %7 : vector<1x32xf32>
    %234 = arith.negf %231 : vector<1x256xf32>
    %235 = math.exp %234 : vector<1x256xf32>
    %cst_50 = arith.constant 1.000000e+00 : f32
    %236 = vector.broadcast %cst_50 : f32 to vector<1x256xf32>
    %237 = arith.addf %236, %235 : vector<1x256xf32>
    %238 = arith.divf %236, %237 : vector<1x256xf32>
    %239 = vector.extract_strided_slice %238 {offsets = [0, 0], sizes = [1, 32], strides = [1, 1]} : vector<1x256xf32> to vector<1x32xf32>
    %240 = vector.extract_strided_slice %238 {offsets = [0, 128], sizes = [1, 32], strides = [1, 1]} : vector<1x256xf32> to vector<1x32xf32>
    %241 = vector.extract_strided_slice %227 {offsets = [0, 256], sizes = [1, 32], strides = [1, 1]} : vector<1x384xf32> to vector<1x32xf32>
    %242 = arith.mulf %239, %233 : vector<1x32xf32>
    %243 = arith.addf %241, %242 : vector<1x32xf32>
    %244 = math.tanh %243 : vector<1x32xf32>
    %cst_51 = arith.constant 1.000000e+00 : f32
    %245 = vector.broadcast %cst_51 : f32 to vector<1x32xf32>
    %246 = arith.subf %245, %240 : vector<1x32xf32>
    %247 = arith.mulf %246, %244 : vector<1x32xf32>
    %248 = arith.mulf %240, %204 : vector<1x32xf32>
    %249 = arith.addf %247, %248 : vector<1x32xf32>
    %250 = tpu.concatenate %249, %225 in 1 : vector<1x32xf32>, vector<1x32xf32> -> vector<1x64xf32>
    %cst_52 = arith.constant dense<0.000000e+00> : vector<1x512xf32>
    %251 = tpu.matmul %250, %8, %cst_52 {dimension_numbers = #tpu.dot_dimension_numbers<[1], [0], [0], [1], [0, 0, 1, 1], [], []>} : vector<1x64xf32>, vector<64x512xf32>, vector<1x512xf32> -> vector<1x512xf32>
    %252 = arith.addf %251, %9 : vector<1x512xf32>
    %253 = vector.extract_strided_slice %252 {offsets = [0, 0], sizes = [1, 256], strides = [1, 1]} : vector<1x512xf32> to vector<1x256xf32>
    %254 = arith.negf %253 : vector<1x256xf32>
    %255 = math.exp %254 : vector<1x256xf32>
    %cst_53 = arith.constant 1.000000e+00 : f32
    %256 = vector.broadcast %cst_53 : f32 to vector<1x256xf32>
    %257 = arith.addf %256, %255 : vector<1x256xf32>
    %258 = arith.divf %256, %257 : vector<1x256xf32>
    %259 = vector.extract_strided_slice %258 {offsets = [0, 0], sizes = [1, 32], strides = [1, 1]} : vector<1x256xf32> to vector<1x32xf32>
    %260 = vector.extract_strided_slice %258 {offsets = [0, 128], sizes = [1, 32], strides = [1, 1]} : vector<1x256xf32> to vector<1x32xf32>
    %261 = vector.extract_strided_slice %252 {offsets = [0, 256], sizes = [1, 32], strides = [1, 1]} : vector<1x512xf32> to vector<1x32xf32>
    %262 = vector.extract_strided_slice %252 {offsets = [0, 384], sizes = [1, 32], strides = [1, 1]} : vector<1x512xf32> to vector<1x32xf32>
    %263 = arith.mulf %259, %262 : vector<1x32xf32>
    %264 = arith.addf %261, %263 : vector<1x32xf32>
    %265 = math.tanh %264 : vector<1x32xf32>
    %cst_54 = arith.constant 1.000000e+00 : f32
    %266 = vector.broadcast %cst_54 : f32 to vector<1x32xf32>
    %267 = arith.subf %266, %260 : vector<1x32xf32>
    %268 = arith.mulf %267, %265 : vector<1x32xf32>
    %269 = arith.mulf %260, %225 : vector<1x32xf32>
    %270 = arith.addf %268, %269 : vector<1x32xf32>
    %c5 = arith.constant 5 : index
    %c0_55 = arith.constant 0 : index
    %271 = vector.load %arg10[%c5, %c0_55] : memref<8x32xf32, #tpu.memory_space<vmem>>, vector<1x32xf32>
    tpu.vector_store %arg10[%c5, %c0_55], %270 {strides = array<i32>} : memref<8x32xf32, #tpu.memory_space<vmem>>, vector<1x32xf32>,
    %272 = vector.extract_strided_slice %5 {offsets = [6, 0], sizes = [1, 384], strides = [1, 1]} : vector<8x384xf32> to vector<1x384xf32>
    %cst_56 = arith.constant dense<0.000000e+00> : vector<1x384xf32>
    %273 = tpu.matmul %249, %6, %cst_56 {dimension_numbers = #tpu.dot_dimension_numbers<[1], [0], [0], [1], [0, 0, 1, 1], [], []>} : vector<1x32xf32>, vector<32x384xf32>, vector<1x384xf32> -> vector<1x384xf32>
    %274 = vector.extract_strided_slice %272 {offsets = [0, 0], sizes = [1, 256], strides = [1, 1]} : vector<1x384xf32> to vector<1x256xf32>
    %275 = vector.extract_strided_slice %273 {offsets = [0, 0], sizes = [1, 256], strides = [1, 1]} : vector<1x384xf32> to vector<1x256xf32>
    %276 = arith.addf %274, %275 : vector<1x256xf32>
    %277 = vector.extract_strided_slice %273 {offsets = [0, 256], sizes = [1, 32], strides = [1, 1]} : vector<1x384xf32> to vector<1x32xf32>
    %278 = arith.addf %277, %7 : vector<1x32xf32>
    %279 = arith.negf %276 : vector<1x256xf32>
    %280 = math.exp %279 : vector<1x256xf32>
    %cst_57 = arith.constant 1.000000e+00 : f32
    %281 = vector.broadcast %cst_57 : f32 to vector<1x256xf32>
    %282 = arith.addf %281, %280 : vector<1x256xf32>
    %283 = arith.divf %281, %282 : vector<1x256xf32>
    %284 = vector.extract_strided_slice %283 {offsets = [0, 0], sizes = [1, 32], strides = [1, 1]} : vector<1x256xf32> to vector<1x32xf32>
    %285 = vector.extract_strided_slice %283 {offsets = [0, 128], sizes = [1, 32], strides = [1, 1]} : vector<1x256xf32> to vector<1x32xf32>
    %286 = vector.extract_strided_slice %272 {offsets = [0, 256], sizes = [1, 32], strides = [1, 1]} : vector<1x384xf32> to vector<1x32xf32>
    %287 = arith.mulf %284, %278 : vector<1x32xf32>
    %288 = arith.addf %286, %287 : vector<1x32xf32>
    %289 = math.tanh %288 : vector<1x32xf32>
    %cst_58 = arith.constant 1.000000e+00 : f32
    %290 = vector.broadcast %cst_58 : f32 to vector<1x32xf32>
    %291 = arith.subf %290, %285 : vector<1x32xf32>
    %292 = arith.mulf %291, %289 : vector<1x32xf32>
    %293 = arith.mulf %285, %249 : vector<1x32xf32>
    %294 = arith.addf %292, %293 : vector<1x32xf32>
    %295 = tpu.concatenate %294, %270 in 1 : vector<1x32xf32>, vector<1x32xf32> -> vector<1x64xf32>
    %cst_59 = arith.constant dense<0.000000e+00> : vector<1x512xf32>
    %296 = tpu.matmul %295, %8, %cst_59 {dimension_numbers = #tpu.dot_dimension_numbers<[1], [0], [0], [1], [0, 0, 1, 1], [], []>} : vector<1x64xf32>, vector<64x512xf32>, vector<1x512xf32> -> vector<1x512xf32>
    %297 = arith.addf %296, %9 : vector<1x512xf32>
    %298 = vector.extract_strided_slice %297 {offsets = [0, 0], sizes = [1, 256], strides = [1, 1]} : vector<1x512xf32> to vector<1x256xf32>
    %299 = arith.negf %298 : vector<1x256xf32>
    %300 = math.exp %299 : vector<1x256xf32>
    %cst_60 = arith.constant 1.000000e+00 : f32
    %301 = vector.broadcast %cst_60 : f32 to vector<1x256xf32>
    %302 = arith.addf %301, %300 : vector<1x256xf32>
    %303 = arith.divf %301, %302 : vector<1x256xf32>
    %304 = vector.extract_strided_slice %303 {offsets = [0, 0], sizes = [1, 32], strides = [1, 1]} : vector<1x256xf32> to vector<1x32xf32>
    %305 = vector.extract_strided_slice %303 {offsets = [0, 128], sizes = [1, 32], strides = [1, 1]} : vector<1x256xf32> to vector<1x32xf32>
    %306 = vector.extract_strided_slice %297 {offsets = [0, 256], sizes = [1, 32], strides = [1, 1]} : vector<1x512xf32> to vector<1x32xf32>
    %307 = vector.extract_strided_slice %297 {offsets = [0, 384], sizes = [1, 32], strides = [1, 1]} : vector<1x512xf32> to vector<1x32xf32>
    %308 = arith.mulf %304, %307 : vector<1x32xf32>
    %309 = arith.addf %306, %308 : vector<1x32xf32>
    %310 = math.tanh %309 : vector<1x32xf32>
    %cst_61 = arith.constant 1.000000e+00 : f32
    %311 = vector.broadcast %cst_61 : f32 to vector<1x32xf32>
    %312 = arith.subf %311, %305 : vector<1x32xf32>
    %313 = arith.mulf %312, %310 : vector<1x32xf32>
    %314 = arith.mulf %305, %270 : vector<1x32xf32>
    %315 = arith.addf %313, %314 : vector<1x32xf32>
    %c6 = arith.constant 6 : index
    %c0_62 = arith.constant 0 : index
    %316 = vector.load %arg10[%c6, %c0_62] : memref<8x32xf32, #tpu.memory_space<vmem>>, vector<1x32xf32>
    tpu.vector_store %arg10[%c6, %c0_62], %315 {strides = array<i32>} : memref<8x32xf32, #tpu.memory_space<vmem>>, vector<1x32xf32>,
    %317 = vector.extract_strided_slice %5 {offsets = [7, 0], sizes = [1, 384], strides = [1, 1]} : vector<8x384xf32> to vector<1x384xf32>
    %cst_63 = arith.constant dense<0.000000e+00> : vector<1x384xf32>
    %318 = tpu.matmul %294, %6, %cst_63 {dimension_numbers = #tpu.dot_dimension_numbers<[1], [0], [0], [1], [0, 0, 1, 1], [], []>} : vector<1x32xf32>, vector<32x384xf32>, vector<1x384xf32> -> vector<1x384xf32>
    %319 = vector.extract_strided_slice %317 {offsets = [0, 0], sizes = [1, 256], strides = [1, 1]} : vector<1x384xf32> to vector<1x256xf32>
    %320 = vector.extract_strided_slice %318 {offsets = [0, 0], sizes = [1, 256], strides = [1, 1]} : vector<1x384xf32> to vector<1x256xf32>
    %321 = arith.addf %319, %320 : vector<1x256xf32>
    %322 = vector.extract_strided_slice %318 {offsets = [0, 256], sizes = [1, 32], strides = [1, 1]} : vector<1x384xf32> to vector<1x32xf32>
    %323 = arith.addf %322, %7 : vector<1x32xf32>
    %324 = arith.negf %321 : vector<1x256xf32>
    %325 = math.exp %324 : vector<1x256xf32>
    %cst_64 = arith.constant 1.000000e+00 : f32
    %326 = vector.broadcast %cst_64 : f32 to vector<1x256xf32>
    %327 = arith.addf %326, %325 : vector<1x256xf32>
    %328 = arith.divf %326, %327 : vector<1x256xf32>
    %329 = vector.extract_strided_slice %328 {offsets = [0, 0], sizes = [1, 32], strides = [1, 1]} : vector<1x256xf32> to vector<1x32xf32>
    %330 = vector.extract_strided_slice %328 {offsets = [0, 128], sizes = [1, 32], strides = [1, 1]} : vector<1x256xf32> to vector<1x32xf32>
    %331 = vector.extract_strided_slice %317 {offsets = [0, 256], sizes = [1, 32], strides = [1, 1]} : vector<1x384xf32> to vector<1x32xf32>
    %332 = arith.mulf %329, %323 : vector<1x32xf32>
    %333 = arith.addf %331, %332 : vector<1x32xf32>
    %334 = math.tanh %333 : vector<1x32xf32>
    %cst_65 = arith.constant 1.000000e+00 : f32
    %335 = vector.broadcast %cst_65 : f32 to vector<1x32xf32>
    %336 = arith.subf %335, %330 : vector<1x32xf32>
    %337 = arith.mulf %336, %334 : vector<1x32xf32>
    %338 = arith.mulf %330, %294 : vector<1x32xf32>
    %339 = arith.addf %337, %338 : vector<1x32xf32>
    %340 = tpu.concatenate %339, %315 in 1 : vector<1x32xf32>, vector<1x32xf32> -> vector<1x64xf32>
    %cst_66 = arith.constant dense<0.000000e+00> : vector<1x512xf32>
    %341 = tpu.matmul %340, %8, %cst_66 {dimension_numbers = #tpu.dot_dimension_numbers<[1], [0], [0], [1], [0, 0, 1, 1], [], []>} : vector<1x64xf32>, vector<64x512xf32>, vector<1x512xf32> -> vector<1x512xf32>
    %342 = arith.addf %341, %9 : vector<1x512xf32>
    %343 = vector.extract_strided_slice %342 {offsets = [0, 0], sizes = [1, 256], strides = [1, 1]} : vector<1x512xf32> to vector<1x256xf32>
    %344 = arith.negf %343 : vector<1x256xf32>
    %345 = math.exp %344 : vector<1x256xf32>
    %cst_67 = arith.constant 1.000000e+00 : f32
    %346 = vector.broadcast %cst_67 : f32 to vector<1x256xf32>
    %347 = arith.addf %346, %345 : vector<1x256xf32>
    %348 = arith.divf %346, %347 : vector<1x256xf32>
    %349 = vector.extract_strided_slice %348 {offsets = [0, 0], sizes = [1, 32], strides = [1, 1]} : vector<1x256xf32> to vector<1x32xf32>
    %350 = vector.extract_strided_slice %348 {offsets = [0, 128], sizes = [1, 32], strides = [1, 1]} : vector<1x256xf32> to vector<1x32xf32>
    %351 = vector.extract_strided_slice %342 {offsets = [0, 256], sizes = [1, 32], strides = [1, 1]} : vector<1x512xf32> to vector<1x32xf32>
    %352 = vector.extract_strided_slice %342 {offsets = [0, 384], sizes = [1, 32], strides = [1, 1]} : vector<1x512xf32> to vector<1x32xf32>
    %353 = arith.mulf %349, %352 : vector<1x32xf32>
    %354 = arith.addf %351, %353 : vector<1x32xf32>
    %355 = math.tanh %354 : vector<1x32xf32>
    %cst_68 = arith.constant 1.000000e+00 : f32
    %356 = vector.broadcast %cst_68 : f32 to vector<1x32xf32>
    %357 = arith.subf %356, %350 : vector<1x32xf32>
    %358 = arith.mulf %357, %355 : vector<1x32xf32>
    %359 = arith.mulf %350, %315 : vector<1x32xf32>
    %360 = arith.addf %358, %359 : vector<1x32xf32>
    %c7 = arith.constant 7 : index
    %c0_69 = arith.constant 0 : index
    %361 = vector.load %arg10[%c7, %c0_69] : memref<8x32xf32, #tpu.memory_space<vmem>>, vector<1x32xf32>
    tpu.vector_store %arg10[%c7, %c0_69], %360 {strides = array<i32>} : memref<8x32xf32, #tpu.memory_space<vmem>>, vector<1x32xf32>,
    %c0_70 = arith.constant 0 : index
    %c0_71 = arith.constant 0 : index
    %362 = vector.load %arg10[%c0_70, %c0_71] : memref<8x32xf32, #tpu.memory_space<vmem>>, vector<8x32xf32>
    %c0_72 = arith.constant 0 : index
    %c0_73 = arith.constant 0 : index
    %363 = vector.load %arg7[%c0_72, %c0_73] : memref<32x128xf32, #tpu.memory_space<vmem>>, vector<32x128xf32>
    %cst_74 = arith.constant dense<0.000000e+00> : vector<8x128xf32>
    %364 = tpu.matmul %362, %363, %cst_74 {dimension_numbers = #tpu.dot_dimension_numbers<[1], [0], [0], [1], [0, 0, 1, 1], [], []>} : vector<8x32xf32>, vector<32x128xf32>, vector<8x128xf32> -> vector<8x128xf32>
    %c0_75 = arith.constant 0 : index
    %c0_76 = arith.constant 0 : index
    %365 = vector.load %arg8[%c0_75, %c0_76] : memref<1x128xf32, #tpu.memory_space<vmem>>, vector<1x128xf32>
    %366 = vector.broadcast %365 : vector<1x128xf32> to vector<8x128xf32>
    %367 = arith.addf %364, %366 : vector<8x128xf32>
    %368 = math.exp %367 : vector<8x128xf32>
    %c0_77 = arith.constant 0 : index
    %c0_78 = arith.constant 0 : index
    %369 = vector.load %arg9[%c0_77, %c0_78] : memref<8x128xf32, #tpu.memory_space<vmem>>, vector<8x128xf32>
    tpu.vector_store %arg9[%c0_77, %c0_78], %368 {strides = array<i32>} : memref<8x128xf32, #tpu.memory_space<vmem>>, vector<8x128xf32>,
    return
  }
}

</mosaic_0001>

<bundles_post_ra>
// kernel: tpu_custom_call.1
= control target key start
LH: loop header
LB: loop body
LE: loop exit
PB: predicated region body
PF: predicated region fallthrough
CT: control target
= control target key end

     0   :  { %14 = vsyncpa [#allocation4], 0  ;;  %s4565_s0 = inlined_call_operand.vmem [shape: f32[8,4], index: 0, kind: input, shape index: {}]   ;;  %s4566_s1 = inlined_call_operand.hbm [shape: f32[4,384], index: 1, kind: input, shape index: {}]   ;;  %s4567_s2 = inlined_call_operand.hbm [shape: f32[1,384], index: 2, kind: input, shape index: {}]   ;;  %s4568_s3 = inlined_call_operand.hbm [shape: f32[32,384], index: 3, kind: input, shape index: {}]   ;;  %s4569_s4 = inlined_call_operand.vmem [shape: f32[1,32], index: 4, kind: input, shape index: {}]   ;;  %s4570_s5 = inlined_call_operand.hbm [shape: f32[64,512], index: 5, kind: input, shape index: {}]   ;;  %s4571_s6 = inlined_call_operand.vmem [shape: f32[1,512], index: 6, kind: input, shape index: {}]   ;;  %s4572_s7 = inlined_call_operand.vmem [shape: f32[32,128], index: 7, kind: input, shape index: {}]   ;;  %s4573_s8 = inlined_call_operand.vmem [shape: f32[1,128], index: 8, kind: input, shape index: {}]   ;;  %s4574_s9 = inlined_call_operand.hbm [shape: f32[8,128], index: 9, kind: output, shape index: {}]  }
   0x1   :  { %15 = vsyncpa [#allocation7], 0 }
   0x2   :  { %16 = vsyncpa [#allocation10], 0 }
   0x3   :  { %17 = vsyncpa [#allocation5], 0  ;;  %s3922_s30 = smov [#allocation6]   ;;  %s3923_s11 = smov [#allocation3]  }
   0x4   :  { %s36_s10 = sshll.u32 %s3922_s30, 4  ;;  %s26_s12 = sshll.u32 %s3923_s11, 4  ;;  %s37_s10 = int_to_ptr.vmem [resolvable:$true] %s36_s10  ;;  %s27_s12 = int_to_ptr.vmem [resolvable:$true] %s26_s12 }
   0x5   :  { %s3804_s15 = scalar_lea.hbm %s4567_s2, 48 }
   0x6   :  { %p3805_p0 = scmp.ne.s32.totalorder %s4567_s2, %s3804_s15  ;;  %p3808_p1 = scmp.lt.u32.totalorder %s3804_s15, %s4567_s2 }
   0x8   :  { %p3810_p2 = pnand %p3808_p1, %p3805_p0 }
   0xa   :  { %3813 = shalt.err (!%p3810_p2)
}
   0xb   :  { %s3814_s20 = scalar_lea.vmem %s37_s10, 48  ;;  %s3818_s21 = scalar_lea.vmem %s37_s10, 64 }
   0xc   :  { %p3815_p3 = scmp.ne.s32.totalorder %s37_s10, %s3814_s20  ;;  %p3819_p4 = scmp.lt.s32.totalorder %s37_s10, %s37_s10 }
   0xd   :  { %p3820_p5 = scmp.lt.s32.totalorder %s3818_s21, %s3814_s20 }
   0xf   :  { %p3821_p6 = por %p3820_p5, %p3819_p4 }
  0x11   :  { %p3822_p7 = pnand %p3821_p6, %p3815_p3 }
  0x13   :  { %3825 = shalt.err (!%p3822_p7)
}
  0x14   :  { %39 = dma.hbm_to_vmem [thread:$0]  %s4567_s2, 48, %s37_s10, [#allocation7]  }
  0x15   :  { %s3826_s26 = scalar_lea.hbm %s4566_s1, 192 }
  0x16   :  { %p3827_p8 = scmp.ne.s32.totalorder %s4566_s1, %s3826_s26  ;;  %p3830_p9 = scmp.lt.u32.totalorder %s3826_s26, %s4566_s1 }
  0x18   :  { %p3832_p10 = pnand %p3830_p9, %p3827_p8 }
  0x1a   :  { %3835 = shalt.err (!%p3832_p10)
}
  0x1b   :  { %s3836_s11 = scalar_lea.vmem %s27_s12, 192  ;;  %p3841_p12 = scmp.lt.s32.totalorder %s27_s12, %s27_s12 }
  0x1c   :  { %p3837_p11 = scmp.ne.s32.totalorder %s27_s12, %s3836_s11  ;;  %p3842_p13 = scmp.lt.s32.totalorder %s3836_s11, %s3836_s11 }
  0x1e   :  { %p3843_p0 = por %p3842_p13, %p3841_p12 }
  0x20   :  { %p3844_p1 = pnand %p3843_p0, %p3837_p11 }
  0x22   :  { %3847 = shalt.err (!%p3844_p1)
}
  0x23   :  { %29 = dma.hbm_to_vmem [thread:$0]  %s4566_s1, 192, %s27_s12, [#allocation4]  }
  0x24   :  { %s3924_s13 = smov [#allocation8]   ;;  %s3848_s17 = scalar_lea.hbm %s4568_s3, 1536 }
  0x25   :  { %s45_s14 = sshll.u32 %s3924_s13, 4  ;;  %p3849_p2 = scmp.ne.s32.totalorder %s4568_s3, %s3848_s17  ;;  %s46_s14 = int_to_ptr.vmem [resolvable:$true] %s45_s14 }
  0x26   :  { %p3852_p3 = scmp.lt.u32.totalorder %s3848_s17, %s4568_s3 }
  0x28   :  { %p3854_p4 = pnand %p3852_p3, %p3849_p2 }
  0x2a   :  { %3857 = shalt.err (!%p3854_p4)
}
  0x2b   :  { %s3858_s22 = scalar_lea.vmem %s46_s14, 1536  ;;  %p3863_p6 = scmp.lt.s32.totalorder %s46_s14, %s46_s14 }
  0x2c   :  { %p3859_p5 = scmp.ne.s32.totalorder %s46_s14, %s3858_s22  ;;  %p3864_p7 = scmp.lt.s32.totalorder %s3858_s22, %s3858_s22 }
  0x2e   :  { %p3865_p8 = por %p3864_p7, %p3863_p6 }
  0x30   :  { %p3866_p9 = pnand %p3865_p8, %p3859_p5 }
  0x32   :  { %3869 = shalt.err (!%p3866_p9)
}
  0x33   :  { %s3925_s1 = smov 384   ;;  %s3926_s12 = smov 24  }
  0x34   :  { %51 = dma.hbm_to_vmem [thread:$0]  %s4568_s3, 1536, %s46_s14, [#allocation7], %s3925_s1, %s3925_s1, %s3926_s12  }
  0x35   :  { %s3927_s25 = smov [#allocation9]   ;;  %s3870_s29 = scalar_lea.hbm %s4570_s5, 4096 }
  0x36   :  { %s59_s26 = sshll.u32 %s3927_s25, 4  ;;  %p3871_p10 = scmp.ne.s32.totalorder %s4570_s5, %s3870_s29  ;;  %s60_s26 = int_to_ptr.vmem [resolvable:$true] %s59_s26 }
  0x37   :  { %p3874_p11 = scmp.lt.u32.totalorder %s3870_s29, %s4570_s5 }
  0x39   :  { %p3876_p12 = pnand %p3874_p11, %p3871_p10 }
  0x3b   :  { %3879 = shalt.err (!%p3876_p12)
}
  0x3c   :  { %s3880_s13 = scalar_lea.vmem %s60_s26, 4096  ;;  %p3885_p0 = scmp.lt.s32.totalorder %s60_s26, %s60_s26 }
  0x3d   :  { %p3881_p13 = scmp.ne.s32.totalorder %s60_s26, %s3880_s13  ;;  %p3886_p1 = scmp.lt.s32.totalorder %s3880_s13, %s3880_s13 }
  0x3f   :  { %p3887_p2 = por %p3886_p1, %p3885_p0 }
  0x41   :  { %p3888_p3 = pnand %p3887_p2, %p3881_p13 }
  0x43   :  { %3891 = shalt.err (!%p3888_p3)
}
  0x44   :  { %s3928_s3 = smov 512   ;;  %s3929_s14 = smov 32  }
  0x45   :  { %65 = dma.hbm_to_vmem [thread:$0]  %s4570_s5, 4096, %s60_s26, [#allocation10], %s3928_s3, %s3928_s3, %s3929_s14  }
  0x46   :  { %3914 = dma.done.wait [#allocation4], 192  }
  0x47   :  { %3915 = vsyncadd [#allocation4], 4294967104 }
  0x48   :  { %3916 = dma.done.wait [#allocation7], 1584  }
  0x49   :  { %3917 = vsyncadd [#allocation7], 4294965712 }
  0x4a   :  { %3918 = dma.done.wait [#allocation10], 4096  }
  0x4b   :  { %3919 = vsyncadd [#allocation10], 4294963200  ;;  %v3930_v0 = vmov 0.0   ;;  %v85_v1 = vld [vmem:[#allocation3] sm:$0xff]  ;;  %vm111_vm0 = vcmask 1043456   ;;  %v84_v3 = vld [vmem:[%s4565_s0] sm:$0xff]  ;;  %v89_v57 = vlaneseq }
  0x4c   :  { %182 = vmatprep.mubr.f32.mxu1 %v3930_v0  ;;  %413 = vmatprep.mubr.f32.mxu0 %v3930_v0  ;;  %v106_v2 = vcombine.high %v85_v1, %v85_v1  ;;  %vm107_vm1 = vcmask 31744   ;;  %v86_v4 = vld [vmem:[#allocation3 + $0x8] sm:$0xf]  ;;  %vm3931_vm2 = vmmov 0   ;;  %v273_v5 = vld [vmem:[#allocation9 + $0x8] sm:$0xff]  ;;  %v272_v10 = vld [vmem:[#allocation9] sm:$0xff] }
  0x4d   :  { %v277_v6 = vld [vmem:[#allocation9 + $0x28] sm:$0xff]  ;;  %v275_v7 = vld [vmem:[#allocation9 + $0x18] sm:$0xff]  ;;  %v276_v11 = vld [vmem:[#allocation9 + $0x20] sm:$0xff]  ;;  %v3932_v56 = vmov 0.0|0.0   ;;  %v4094_v58 = vshrl.u32 %v89_v57, 7  ;;  %vm322_vm3 = vcmask 261120  }
  0x4e   :  { %3064 = vmatprep.subr.msk.mxu1 %vm111_vm0, %v106_v2  ;;  %v4042_v8 = vpack.c.bf16 %v277_v6, %v273_v5  ;;  %v279_v9 = vld [vmem:[#allocation9 + $0x38] sm:$0xff]  ;;  %v274_v13 = vld [vmem:[#allocation9 + $0x10] sm:$0xff]  ;;  %v281_v15 = vld [vmem:[#allocation9 + $0x48] sm:$0xff]  ;;  %v4047_v16 = vpack.c.bf16 %v276_v11, %v272_v10  ;;  %vm345_vm4 = vcmask 523264   ;;  %vm508_vm5 = vcmask 253952   ;;  %s3933_s28 = smov [#allocation11]  }
  0x4f   :  { %3065 = vmatpush1.msk.msra.mxu1 %vm111_vm0, %v85_v1  ;;  %v4044_v12 = vpack.c.bf16 %v279_v9, %v275_v7  ;;  %v278_v14 = vld [vmem:[#allocation9 + $0x30] sm:$0xff]  ;;  %v285_v18 = vld [vmem:[#allocation9 + $0x68] sm:$0xff]  ;;  %v283_v19 = vld [vmem:[#allocation9 + $0x58] sm:$0xff]  ;;  %v91_v59 = vsub.s32 0, %v4094_v58  ;;  %v95_v61 = vsub.s32 1, %v4094_v58  ;;  %s3053_s29 = sshll.u32 %s3933_s28, 4  ;;  %s3054_s29 = int_to_ptr.vmem [resolvable:$true] %s3053_s29 }
  0x50   :  { %3066 = vmatmul.mubr.msk.f32.vlgmr.msra.gmra.mrb[0].mxu1 %vm107_vm1, %v84_v3  ;;  %3175 = vmatprep.subr.mxu1 %v3930_v0  ;;  %v4049_v17 = vpack.c.bf16 %v278_v14, %v274_v13  ;;  %v287_v20 = vld [vmem:[#allocation9 + $0x78] sm:$0xff]  ;;  %v4052_v21 = vpack.c.bf16 %v285_v18, %v281_v15  ;;  %v280_v23 = vld [vmem:[#allocation9 + $0x40] sm:$0xff]  ;;  %v282_v25 = vld [vmem:[#allocation9 + $0x50] sm:$0xff]  ;;  %v99_v13 = vsub.s32 2, %v4094_v58  ;;  %s3892_s30 = scalar_lea.vmem %s3054_s29, 128  ;;  %p3897_p5 = scmp.lt.s32.totalorder %s3054_s29, %s3054_s29 }
  0x51   :  { %3176 = vmatpush3.msk.msra.mxu1 %vm111_vm0, %v86_v4  ;;  %3177 = vmatprep.mubr.msk.f32.mxu1 %vm3931_vm2, %v3930_v0  ;;  %v4054_v22 = vpack.c.bf16 %v287_v20, %v283_v19  ;;  %v284_v24 = vld [vmem:[#allocation9 + $0x60] sm:$0xff]  ;;  %v286_v27 = vld [vmem:[#allocation9 + $0x70] sm:$0xff]  ;;  %v289_v28 = vld [vmem:[#allocation9 + $0x88] sm:$0xff]  ;;  %p3893_p4 = scmp.ne.s32.totalorder %s3054_s29, %s3892_s30  ;;  %p3898_p6 = scmp.lt.s32.totalorder %s3892_s30, %s3892_s30 }
  0x52   :  { %3269 = vmatprep.subr.bf16.mxu0 %v4042_v8  ;;  %3285 = vmatprep.subr.bf16.mxu1 %v4044_v12  ;;  %v4058_v26 = vpack.c.bf16 %v284_v24, %v280_v23  ;;  %v293_v29 = vld [vmem:[#allocation9 + $0xa8] sm:$0xff]  ;;  %v4062_v30 = vpack.c.bf16 %v286_v27, %v282_v25  ;;  %v291_v32 = vld [vmem:[#allocation9 + $0x98] sm:$0xff]  ;;  %v288_v34 = vld [vmem:[#allocation9 + $0x80] sm:$0xff] }
  0x53   :  { %3271 = vmatpush1.bf16.msra.mxu0 %v4047_v16  ;;  %v4064_v31 = vpack.c.bf16 %v293_v29, %v289_v28  ;;  %v295_v33 = vld [vmem:[#allocation9 + $0xb8] sm:$0xff]  ;;  %v292_v36 = vld [vmem:[#allocation9 + $0xa0] sm:$0xff]  ;;  %v290_v37 = vld [vmem:[#allocation9 + $0x90] sm:$0xff]  ;;  %p3899_p7 = por %p3898_p6, %p3897_p5 }
  0x54   :  { %3178 = vmatmul.mubr.msk.f32.vlgmr.msra.gmra.mrb[2].mxu1 %vm107_vm1, %v84_v3  ;;  %3273 = vmatprep.subr.bf16.mxu0 %v4052_v21  ;;  %v4066_v35 = vpack.c.bf16 %v295_v33, %v291_v32  ;;  %v294_v38 = vld [vmem:[#allocation9 + $0xb0] sm:$0xff]  ;;  %v297_v39 = vld [vmem:[#allocation9 + $0xc8] sm:$0xff]  ;;  %v299_v41 = vld [vmem:[#allocation9 + $0xd8] sm:$0xff]  ;;  %v4070_v42 = vpack.c.bf16 %v292_v36, %v288_v34 }
  0x55   :  { %484 = vmatprep.mubr.f32.mxu1 %v3930_v0  ;;  %3287 = vmatpush1.bf16.msra.mxu1 %v4049_v17  ;;  %v301_v40 = vld [vmem:[#allocation9 + $0xe8] sm:$0xff]  ;;  %v4072_v43 = vpack.c.bf16 %v294_v38, %v290_v37  ;;  %v303_v44 = vld [vmem:[#allocation9 + $0xf8] sm:$0xff]  ;;  %v296_v45 = vld [vmem:[#allocation9 + $0xc0] sm:$0xff]  ;;  %p3900_p8 = pnand %p3899_p7, %p3893_p4 }
  0x56   :  { %3289 = vmatprep.subr.bf16.mxu1 %v4054_v22  ;;  %v4076_v46 = vpack.c.bf16 %v301_v40, %v297_v39  ;;  %v4078_v47 = vpack.c.bf16 %v303_v44, %v299_v41  ;;  %v300_v48 = vld [vmem:[#allocation9 + $0xe0] sm:$0xff]  ;;  %v298_v49 = vld [vmem:[#allocation9 + $0xd0] sm:$0xff]  ;;  %v260_v51 = vld [vmem:[#allocation8 + $0x8] sm:$0xff] }
  0x57   :  { %3275 = vmatpush1.bf16.msra.mxu0 %v4058_v26  ;;  %v302_v50 = vld [vmem:[#allocation9 + $0xf0] sm:$0xff]  ;;  %v263_v52 = vld [vmem:[#allocation8 + $0x20] sm:$0xff]  ;;  %v4082_v53 = vpack.c.bf16 %v300_v48, %v296_v45  ;;  %v87_v60 = vld [vmem:[#allocation6] sm:$0x7] }
  0x58   :  { %3277 = vmatprep.subr.bf16.mxu0 %v4064_v31  ;;  %v4084_v54 = vpack.c.bf16 %v302_v50, %v298_v49  ;;  %v4088_v55 = vpack.c.bf16 %v263_v52, %v260_v51  ;;  %v92_v62 = vrot.slane %v87_v60, %v91_v59  ;;  %v96_v1 = vrot.slane %v87_v60, %v95_v61  ;;  %v4114_v19 = vld [vmem:[%s4569_s4] sm:$0x1]  ;;  %v259_v28 = vld [vmem:[#allocation8] sm:$0xff]  ;;  %v261_v32 = vld [vmem:[#allocation8 + $0x10] sm:$0xff] }
  0x59   :  { %3291 = vmatpush1.bf16.msra.mxu1 %v4062_v30  ;;  %v100_v15 = vrot.slane %v87_v60, %v99_v13  ;;  %v262_v29 = vld [vmem:[#allocation8 + $0x18] sm:$0xff]  ;;  %v264_v33 = vld [vmem:[#allocation8 + $0x28] sm:$0xff]  ;;  %v269_v37 = vld [vmem:[#allocation8 + $0x50] sm:$0xff] }
  0x5a   :  { %3293 = vmatprep.subr.bf16.mxu1 %v4066_v35  ;;  %v266_v36 = vld [vmem:[#allocation8 + $0x38] sm:$0xff]  ;;  %v4122_v40 = vpack.c.bf16 %v262_v29, %v259_v28  ;;  %v4124_v41 = vpack.c.bf16 %v264_v33, %v261_v32  ;;  %v265_v44 = vld [vmem:[#allocation8 + $0x30] sm:$0xff]  ;;  %v268_v48 = vld [vmem:[#allocation8 + $0x48] sm:$0xff]  ;;  %v339_v33 = vsub.s32 3, %v4094_v58 }
  0x5b   :  { %3279 = vmatpush1.bf16.msra.mxu0 %v4070_v42  ;;  %v4126_v45 = vpack.c.bf16 %v269_v37, %v266_v36  ;;  %v267_v49 = vld [vmem:[#allocation8 + $0x40] sm:$0xff]  ;;  %v270_v50 = vld [vmem:[#allocation8 + $0x58] sm:$0xff]  ;;  %v4134_v52 = vpack.c.bf16 %v268_v48, %v265_v44 }
  0x5c   :  { %3281 = vmatprep.subr.bf16.mxu0 %v4076_v46  ;;  %v4136_v57 = vpack.c.bf16 %v270_v50, %v267_v49  ;;  %v304_v60 = vld [vmem:[%s4571_s6] sm:$0xf] }
  0x5d   :  { %3295 = vmatpush1.bf16.msra.mxu1 %v4072_v43  ;;  %v4185_v36 = vrot.slane %v304_v60, %v339_v33  ;;  %v4189_v44 = vrot.slane %v304_v60, %v99_v13 }
  0x5e   :  { %3297 = vmatprep.subr.bf16.mxu1 %v4078_v47 }
  0x5f   :  { %3283 = vmatpush1.bf16.msra.mxu0 %v4082_v53 }
  0x60   :  { %3301 = vmatprep.subr.bf16.mxu0 %v4088_v55 }
  0x61   :  { %3299 = vmatpush1.bf16.msra.mxu1 %v4084_v54 }
  0x62   :  { %3308 = vmatprep.subr.bf16.mxu1 %v3932_v56 }
 0x123   :  { %v184_v63 = vpop.f32.mrb[0].mxu1 }
 0x124   :  { %v4102_v2 = vadd.f32 %v184_v63, %v92_v62  ;;  %v186_v3 = vpop.f32.mrb[1].mxu1  ;;  %v4174_v62 = vrot.slane %v304_v60, %v91_v59  ;;  %v4178_v63 = vrot.slane %v304_v60, %v95_v61 }
 0x125   :  { %v4105_v5 = vadd.f32 %v186_v3, %v96_v1 }
 0x126   :  { %v3069_v4 = vmul.f32 -1.442695, %v4102_v2 }
 0x127   :  { %v255_v6 = vpop.f32.mrb[2].mxu1  ;;  %v3070_v9 = vmul.f32 -1.442695, %v4105_v5 }
 0x128   :  { %3641 = vpow2.f32 %v3069_v4  ;;  %v3179_v7 = vpop.f32.mrb[3].mxu1  ;;  %v4116_v20 = vadd.f32 %v255_v6, %v100_v15 }
 0x129   :  { %3643 = vpow2.f32 %v3070_v9 }
 0x132   :  { %v3642_v10 = vpop.eup %3641 }
 0x133   :  { %v311_v11 = vadd.f32 1.0, %v3642_v10  ;;  %v3644_v14 = vpop.eup %3643 }
 0x134   :  { %v312_v18 = vadd.f32 1.0, %v3644_v14 }
 0x135   :  { %3645 = vrcp.f32 %v311_v11 }
 0x136   :  { %3647 = vrcp.f32 %v312_v18 }
 0x13f   :  { %v3646_v23 = vpop.eup %3645 }
 0x140   :  { %v317_v24 = vmul.f32 %v3646_v23, %v4114_v19  ;;  %v3648_v27 = vpop.eup %3647 }
 0x141   :  { %v320_v34 = vsub.f32 1.0, %v3648_v27 }
 0x142   :  { %v318_v25 = vadd.f32 %v317_v24, %v4116_v20 }
 0x144   :  { %3649 = vtanh.f32 %v318_v25 }
 0x14e   :  { %v3650_v38 = vpop.eup %3649 }
 0x14f   :  { %v4120_v39 = vmul.f32 %v3650_v38, %v320_v34 }
 0x151   :  { %v323_v51 = vsel %vm322_vm3, %v4120_v39, 0.0  ;;  %v683_v60 = vrot.slane %v4120_v39, 7 }
 0x152   :  { %3071 = vmatmul.mubr.msk.f32.vlgmr.msra.gmra.mrb[0].mxu0 %vm345_vm4, %v323_v51  ;;  %3072 = vmatmul.mubr.msk.f32.vlgmr.msra.gmra.mrb[4].mxu1 %vm345_vm4, %v323_v51 }
 0x153   :  { %3303 = vmatpush1.bf16.msra.mxu0 %v4122_v40  ;;  %3310 = vmatpush3.bf16.msra.mxu1 %v4124_v41 }
 0x154   :  { %3305 = vmatprep.subr.bf16.mxu0 %v4126_v45  ;;  %3311 = vmatprep.subr.bf16.mxu1 %v3932_v56 }
 0x155   :  { %577 = vmatprep.mubr.f32.mxu0 %v3930_v0  ;;  %3188 = vmatprep.mubr.msk.f32.mxu1 %vm3931_vm2, %v3930_v0 }
 0x157   :  { %3307 = vmatpush1.bf16.msra.mxu0 %v4134_v52  ;;  %3313 = vmatpush3.bf16.msra.mxu1 %v4136_v57 }
 0x158   :  { %3315 = vmatprep.subr.bf16.mxu0 %v4042_v8  ;;  %3331 = vmatprep.subr.bf16.mxu1 %v4044_v12 }
 0x15a   :  { %3075 = vmatmul.mubr.msk.f32.vlgmr.msra.gmra.mrb[2].mxu0 %vm322_vm3, %v4120_v39  ;;  %3189 = vmatmul.mubr.msk.f32.vlgmr.msra.gmra.mrb[6].mxu1 %vm322_vm3, %v4120_v39 }
 0x15b   :  { %3317 = vmatpush1.bf16.msra.mxu0 %v4047_v16  ;;  %3333 = vmatpush1.bf16.msra.mxu1 %v4049_v17 }
 0x15c   :  { %3319 = vmatprep.subr.bf16.mxu0 %v4052_v21  ;;  %3335 = vmatprep.subr.bf16.mxu1 %v4054_v22 }
 0x15d   :  { %761 = vmatprep.mubr.f32.mxu0 %v3930_v0  ;;  %832 = vmatprep.mubr.f32.mxu1 %v3930_v0 }
 0x15f   :  { %3321 = vmatpush1.bf16.msra.mxu0 %v4058_v26  ;;  %3337 = vmatpush1.bf16.msra.mxu1 %v4062_v30 }
 0x160   :  { %3323 = vmatprep.subr.bf16.mxu0 %v4064_v31  ;;  %3339 = vmatprep.subr.bf16.mxu1 %v4066_v35 }
 0x163   :  { %3325 = vmatpush1.bf16.msra.mxu0 %v4070_v42  ;;  %3341 = vmatpush1.bf16.msra.mxu1 %v4072_v43 }
 0x164   :  { %3327 = vmatprep.subr.bf16.mxu0 %v4076_v46  ;;  %3343 = vmatprep.subr.bf16.mxu1 %v4078_v47 }
 0x167   :  { %3329 = vmatpush1.bf16.msra.mxu0 %v4082_v53  ;;  %3345 = vmatpush1.bf16.msra.mxu1 %v4084_v54 }
 0x168   :  { %3347 = vmatprep.subr.bf16.mxu0 %v4088_v55  ;;  %3354 = vmatprep.subr.bf16.mxu1 %v3932_v56 }
 0x225   :  { %v415_v1 = vpop.f32.mrb[0].mxu0  ;;  %v486_v3 = vpop.f32.mrb[4].mxu1 }
 0x226   :  { %v416_v4 = vadd.f32 %v415_v1, %v4174_v62  ;;  %v417_v6 = vpop.f32.mrb[1].mxu0  ;;  %v488_v7 = vpop.f32.mrb[5].mxu1 }
 0x227   :  { %v418_v9 = vadd.f32 %v417_v6, %v4178_v63  ;;  %v489_v50 = vadd.f32 %v488_v7, %v4185_v36 }
 0x228   :  { %v3073_v10 = vmul.f32 -1.442695, %v416_v4  ;;  %v487_v4 = vadd.f32 %v486_v3, %v4189_v44 }
 0x229   :  { %v3074_v11 = vmul.f32 -1.442695, %v418_v9 }
 0x22a   :  { %3651 = vpow2.f32 %v3073_v10 }
 0x22b   :  { %3653 = vpow2.f32 %v3074_v11 }
 0x22d   :  { %v579_v14 = vpop.f32.mrb[2].mxu0  ;;  %v650_v15 = vpop.f32.mrb[6].mxu1 }
 0x22e   :  { %v656_v18 = vrot.slane %v579_v14, 7  ;;  %v581_v59 = vpop.f32.mrb[3].mxu0  ;;  %v3190_v23 = vpop.f32.mrb[7].mxu1  ;;  %v662_v10 = vadd.f32 %v650_v15, %v4114_v19 }
 0x22f   :  { %v657_v24 = vrot.slane %v581_v59, 7 }
 0x230   :  { %v660_v61 = vadd.f32 %v656_v18, %v4102_v2  ;;  %v676_v58 = vrot.slane %v662_v10, 7 }
 0x231   :  { %v661_v25 = vadd.f32 %v657_v24, %v4105_v5 }
 0x232   :  { %v3077_v27 = vmul.f32 -1.442695, %v660_v61 }
 0x233   :  { %v3078_v28 = vmul.f32 -1.442695, %v661_v25 }
 0x234   :  { %v3652_v29 = vpop.eup %3651  ;;  %3655 = vpow2.f32 %v3077_v27 }
 0x235   :  { %v497_v32 = vadd.f32 1.0, %v3652_v29  ;;  %3657 = vpow2.f32 %v3078_v28  ;;  %v3654_v34 = vpop.eup %3653 }
 0x236   :  { %v498_v37 = vadd.f32 1.0, %v3654_v34 }
 0x237   :  { %3659 = vrcp.f32 %v497_v32 }
 0x238   :  { %3661 = vrcp.f32 %v498_v37 }
 0x23e   :  { %v3656_v38 = vpop.eup %3655 }
 0x23f   :  { %v3658_v48 = vpop.eup %3657  ;;  %v669_v49 = vadd.f32 1.0, %v3656_v38 }
 0x240   :  { %v670_v51 = vadd.f32 1.0, %v3658_v48 }
 0x241   :  { %v3660_v1 = vpop.eup %3659  ;;  %3663 = vrcp.f32 %v669_v49 }
 0x242   :  { %v503_v6 = vmul.f32 %v3660_v1, %v489_v50  ;;  %3665 = vrcp.f32 %v670_v51  ;;  %v3662_v11 = vpop.eup %3661 }
 0x243   :  { %v506_v23 = vsub.f32 1.0, %v3662_v11 }
 0x244   :  { %v504_v9 = vadd.f32 %v503_v6, %v487_v4 }
 0x246   :  { %3667 = vtanh.f32 %v504_v9 }
 0x24b   :  { %v3664_v13 = vpop.eup %3663 }
 0x24c   :  { %v3666_v14 = vpop.eup %3665  ;;  %v678_v18 = vmul.f32 %v3664_v13, %v676_v58 }
 0x24d   :  { %v685_v59 = vmul.f32 %v3666_v14, %v683_v60  ;;  %v681_v15 = vsub.f32 1.0, %v3666_v14 }
 0x24e   :  { %v679_v7 = vadd.f32 %v678_v18, %v4116_v20 }
 0x250   :  { %v3668_v24 = vpop.eup %3667  ;;  %3669 = vtanh.f32 %v679_v7 }
 0x251   :  { %v4196_v3 = vmul.f32 %v3668_v24, %v506_v23 }
 0x253   :  { %v688_v61 = vrot.slane %v4196_v3, 7  ;;  %509 = vst.msk [vmem:[#allocation2] sm:$0x1] %vm508_vm5, %v4196_v3 }
 0x255   :  { %689 = vrot.lane.b32.xlu0 %v688_v61, %s3929_s14 }
 0x25a   :  { %v3670_v39 = vpop.eup %3669 }
 0x25b   :  { %v682_v25 = vmul.f32 %v3670_v39, %v681_v15 }
 0x25d   :  { %v4202_v27 = vadd.f32 %v685_v59, %v682_v25 }
 0x25f   :  { %v860_v33 = vrot.slane %v4202_v27, 1 }
 0x2c7   :  { %v690_v28 = vpop.permute.xlu0 %689 }
 0x2c8   :  { %v692_v29 = vsel %vm322_vm3, %v4202_v27, %v690_v28 }
 0x2c9   :  { %v694_v32 = vrot.slane %v692_v29, 1 }
 0x2cb   :  { %3079 = vmatmul.mubr.msk.f32.vlgmr.msra.gmra.mrb[4].mxu0 %vm345_vm4, %v694_v32  ;;  %3080 = vmatmul.mubr.msk.f32.vlgmr.msra.gmra.mrb[8].mxu1 %vm345_vm4, %v694_v32 }
 0x2cc   :  { %3349 = vmatpush1.bf16.msra.mxu0 %v4122_v40  ;;  %3356 = vmatpush3.bf16.msra.mxu1 %v4124_v41 }
 0x2cd   :  { %3351 = vmatprep.subr.bf16.mxu0 %v4126_v45  ;;  %3357 = vmatprep.subr.bf16.mxu1 %v3932_v56 }
 0x2ce   :  { %927 = vmatprep.mubr.f32.mxu0 %v3930_v0  ;;  %3199 = vmatprep.mubr.msk.f32.mxu1 %vm3931_vm2, %v3930_v0 }
 0x2d0   :  { %3353 = vmatpush1.bf16.msra.mxu0 %v4134_v52  ;;  %3359 = vmatpush3.bf16.msra.mxu1 %v4136_v57 }
 0x2d1   :  { %3361 = vmatprep.subr.bf16.mxu0 %v4042_v8  ;;  %3377 = vmatprep.subr.bf16.mxu1 %v4044_v12 }
 0x2d3   :  { %3083 = vmatmul.mubr.msk.f32.vlgmr.msra.gmra.mrb[6].mxu0 %vm322_vm3, %v860_v33  ;;  %3200 = vmatmul.mubr.msk.f32.vlgmr.msra.gmra.mrb[10].mxu1 %vm322_vm3, %v860_v33 }
 0x2d4   :  { %3363 = vmatpush1.bf16.msra.mxu0 %v4047_v16  ;;  %3379 = vmatpush1.bf16.msra.mxu1 %v4049_v17 }
 0x2d5   :  { %3365 = vmatprep.subr.bf16.mxu0 %v4052_v21  ;;  %3381 = vmatprep.subr.bf16.mxu1 %v4054_v22 }
 0x2d6   :  { %1111 = vmatprep.mubr.f32.mxu0 %v3930_v0  ;;  %1182 = vmatprep.mubr.f32.mxu1 %v3930_v0 }
 0x2d8   :  { %3367 = vmatpush1.bf16.msra.mxu0 %v4058_v26  ;;  %3383 = vmatpush1.bf16.msra.mxu1 %v4062_v30 }
 0x2d9   :  { %3369 = vmatprep.subr.bf16.mxu0 %v4064_v31  ;;  %3385 = vmatprep.subr.bf16.mxu1 %v4066_v35 }
 0x2dc   :  { %3371 = vmatpush1.bf16.msra.mxu0 %v4070_v42  ;;  %3387 = vmatpush1.bf16.msra.mxu1 %v4072_v43 }
 0x2dd   :  { %3373 = vmatprep.subr.bf16.mxu0 %v4076_v46  ;;  %3389 = vmatprep.subr.bf16.mxu1 %v4078_v47 }
 0x2e0   :  { %3375 = vmatpush1.bf16.msra.mxu0 %v4082_v53  ;;  %3391 = vmatpush1.bf16.msra.mxu1 %v4084_v54 }
 0x2e1   :  { %3393 = vmatprep.subr.bf16.mxu0 %v4088_v55  ;;  %3400 = vmatprep.subr.bf16.mxu1 %v3932_v56 }
 0x39e   :  { %v763_v34 = vpop.f32.mrb[4].mxu0  ;;  %v834_v37 = vpop.f32.mrb[8].mxu1 }
 0x39f   :  { %v764_v38 = vadd.f32 %v763_v34, %v4174_v62  ;;  %v765_v48 = vpop.f32.mrb[5].mxu0  ;;  %v836_v49 = vpop.f32.mrb[9].mxu1  ;;  %v835_v28 = vadd.f32 %v834_v37, %v4189_v44 }
 0x3a0   :  { %v766_v51 = vadd.f32 %v765_v48, %v4178_v63  ;;  %v837_v39 = vadd.f32 %v836_v49, %v4185_v36 }
 0x3a1   :  { %v3081_v50 = vmul.f32 -1.442695, %v764_v38 }
 0x3a2   :  { %v3082_v1 = vmul.f32 -1.442695, %v766_v51 }
 0x3a3   :  { %3671 = vpow2.f32 %v3081_v50 }
 0x3a4   :  { %3673 = vpow2.f32 %v3082_v1 }
 0x3a6   :  { %v929_v4 = vpop.f32.mrb[6].mxu0  ;;  %v1000_v6 = vpop.f32.mrb[10].mxu1 }
 0x3a7   :  { %v1006_v9 = vrot.slane %v929_v4, 6  ;;  %v931_v10 = vpop.f32.mrb[7].mxu0  ;;  %v3201_v11 = vpop.f32.mrb[11].mxu1  ;;  %v1012_v34 = vadd.f32 %v1000_v6, %v4114_v19 }
 0x3a8   :  { %v1007_v58 = vrot.slane %v931_v10, 6 }
 0x3a9   :  { %v1010_v13 = vadd.f32 %v1006_v9, %v4102_v2  ;;  %v1026_v48 = vrot.slane %v1012_v34, 6 }
 0x3aa   :  { %v1011_v14 = vadd.f32 %v1007_v58, %v4105_v5 }
 0x3ab   :  { %v3085_v60 = vmul.f32 -1.442695, %v1010_v13 }
 0x3ac   :  { %v3086_v7 = vmul.f32 -1.442695, %v1011_v14 }
 0x3ad   :  { %v3672_v18 = vpop.eup %3671  ;;  %3675 = vpow2.f32 %v3085_v60  ;;  %v1033_v60 = vrot.slane %v4202_v27, 7 }
 0x3ae   :  { %v845_v59 = vadd.f32 1.0, %v3672_v18  ;;  %v3674_v23 = vpop.eup %3673 }
 0x3af   :  { %v846_v61 = vadd.f32 1.0, %v3674_v23 }
 0x3b0   :  { %3677 = vrcp.f32 %v845_v59 }
 0x3b1   :  { %3679 = vpow2.f32 %v3086_v7 }
 0x3b7   :  { %v3676_v24 = vpop.eup %3675 }
 0x3b8   :  { %v1019_v15 = vadd.f32 1.0, %v3676_v24 }
 0x3ba   :  { %v3678_v25 = vpop.eup %3677  ;;  %3681 = vrcp.f32 %v1019_v15 }
 0x3bb   :  { %3683 = vrcp.f32 %v846_v61  ;;  %v851_v29 = vmul.f32 %v3678_v25, %v837_v39  ;;  %v3680_v33 = vpop.eup %3679 }
 0x3bc   :  { %v1020_v38 = vadd.f32 1.0, %v3680_v33 }
 0x3bd   :  { %v852_v32 = vadd.f32 %v851_v29, %v835_v28 }
 0x3bf   :  { %3685 = vtanh.f32 %v852_v32 }
 0x3c0   :  { %3687 = vrcp.f32 %v1020_v38 }
 0x3c4   :  { %v3682_v50 = vpop.eup %3681 }
 0x3c5   :  { %v3684_v51 = vpop.eup %3683  ;;  %v1028_v1 = vmul.f32 %v3682_v50, %v1026_v48 }
 0x3c6   :  { %v854_v49 = vsub.f32 1.0, %v3684_v51  ;;  %v856_v37 = vmul.f32 %v3684_v51, %v4196_v3 }
 0x3c7   :  { %v1029_v4 = vadd.f32 %v1028_v1, %v4116_v20 }
 0x3c9   :  { %v3686_v9 = vpop.eup %3685  ;;  %3689 = vtanh.f32 %v1029_v4 }
 0x3ca   :  { %v855_v10 = vmul.f32 %v3686_v9, %v854_v49  ;;  %v3688_v6 = vpop.eup %3687 }
 0x3cb   :  { %v1031_v13 = vsub.f32 1.0, %v3688_v6  ;;  %v1035_v59 = vmul.f32 %v3688_v6, %v1033_v60 }
 0x3cc   :  { %v4249_v11 = vadd.f32 %v856_v37, %v855_v10 }
 0x3ce   :  { %v1038_v58 = vrot.slane %v4249_v11, 6  ;;  %858 = vst.msk [vmem:[#allocation2 + $0x1] sm:$0x1] %vm508_vm5, %v4249_v11 }
 0x3d0   :  { %1039 = vrot.lane.b32.xlu0 %v1038_v58, %s3929_s14 }
 0x3d3   :  { %v3690_v14 = vpop.eup %3689 }
 0x3d4   :  { %v1032_v18 = vmul.f32 %v3690_v14, %v1031_v13 }
 0x3d6   :  { %v4256_v7 = vadd.f32 %v1035_v59, %v1032_v18 }
 0x3d8   :  { %v1210_v27 = vrot.slane %v4256_v7, 2 }
 0x442   :  { %v1040_v23 = vpop.permute.xlu0 %1039 }
 0x443   :  { %v1042_v3 = vsel %vm322_vm3, %v4256_v7, %v1040_v23 }
 0x444   :  { %v1044_v24 = vrot.slane %v1042_v3, 2 }
 0x446   :  { %3087 = vmatmul.mubr.msk.f32.vlgmr.msra.gmra.mrb[8].mxu0 %vm345_vm4, %v1044_v24  ;;  %3088 = vmatmul.mubr.msk.f32.vlgmr.msra.gmra.mrb[12].mxu1 %vm345_vm4, %v1044_v24 }
 0x447   :  { %3395 = vmatpush1.bf16.msra.mxu0 %v4122_v40  ;;  %3402 = vmatpush3.bf16.msra.mxu1 %v4124_v41 }
 0x448   :  { %3397 = vmatprep.subr.bf16.mxu0 %v4126_v45  ;;  %3403 = vmatprep.subr.bf16.mxu1 %v3932_v56 }
 0x449   :  { %1277 = vmatprep.mubr.f32.mxu0 %v3930_v0  ;;  %3210 = vmatprep.mubr.msk.f32.mxu1 %vm3931_vm2, %v3930_v0 }
 0x44b   :  { %3399 = vmatpush1.bf16.msra.mxu0 %v4134_v52  ;;  %3405 = vmatpush3.bf16.msra.mxu1 %v4136_v57 }
 0x44c   :  { %3407 = vmatprep.subr.bf16.mxu0 %v4042_v8  ;;  %3423 = vmatprep.subr.bf16.mxu1 %v4044_v12 }
 0x44e   :  { %3091 = vmatmul.mubr.msk.f32.vlgmr.msra.gmra.mrb[10].mxu0 %vm322_vm3, %v1210_v27  ;;  %3211 = vmatmul.mubr.msk.f32.vlgmr.msra.gmra.mrb[14].mxu1 %vm322_vm3, %v1210_v27 }
 0x44f   :  { %3409 = vmatpush1.bf16.msra.mxu0 %v4047_v16  ;;  %3425 = vmatpush1.bf16.msra.mxu1 %v4049_v17 }
 0x450   :  { %3411 = vmatprep.subr.bf16.mxu0 %v4052_v21  ;;  %3427 = vmatprep.subr.bf16.mxu1 %v4054_v22 }
 0x451   :  { %1461 = vmatprep.mubr.f32.mxu0 %v3930_v0  ;;  %1532 = vmatprep.mubr.f32.mxu1 %v3930_v0 }
 0x453   :  { %3413 = vmatpush1.bf16.msra.mxu0 %v4058_v26  ;;  %3429 = vmatpush1.bf16.msra.mxu1 %v4062_v30 }
 0x454   :  { %3415 = vmatprep.subr.bf16.mxu0 %v4064_v31  ;;  %3431 = vmatprep.subr.bf16.mxu1 %v4066_v35 }
 0x457   :  { %3417 = vmatpush1.bf16.msra.mxu0 %v4070_v42  ;;  %3433 = vmatpush1.bf16.msra.mxu1 %v4072_v43 }
 0x458   :  { %3419 = vmatprep.subr.bf16.mxu0 %v4076_v46  ;;  %3435 = vmatprep.subr.bf16.mxu1 %v4078_v47 }
 0x45b   :  { %3421 = vmatpush1.bf16.msra.mxu0 %v4082_v53  ;;  %3437 = vmatpush1.bf16.msra.mxu1 %v4084_v54 }
 0x45c   :  { %3439 = vmatprep.subr.bf16.mxu0 %v4088_v55  ;;  %3446 = vmatprep.subr.bf16.mxu1 %v3932_v56 }
 0x519   :  { %v1113_v61 = vpop.f32.mrb[8].mxu0  ;;  %v1184_v15 = vpop.f32.mrb[12].mxu1 }
 0x51a   :  { %v1114_v39 = vadd.f32 %v1113_v61, %v4174_v62  ;;  %v1115_v25 = vpop.f32.mrb[9].mxu0  ;;  %v1186_v28 = vpop.f32.mrb[13].mxu1  ;;  %v1185_v23 = vadd.f32 %v1184_v15, %v4189_v44 }
 0x51b   :  { %v1116_v32 = vadd.f32 %v1115_v25, %v4178_v63  ;;  %v1187_v18 = vadd.f32 %v1186_v28, %v4185_v36 }
 0x51c   :  { %v3089_v29 = vmul.f32 -1.442695, %v1114_v39 }
 0x51d   :  { %v3090_v33 = vmul.f32 -1.442695, %v1116_v32 }
 0x51e   :  { %3691 = vpow2.f32 %v3089_v29 }
 0x51f   :  { %3693 = vpow2.f32 %v3090_v33 }
 0x521   :  { %v1279_v34 = vpop.f32.mrb[10].mxu0  ;;  %v1350_v38 = vpop.f32.mrb[14].mxu1 }
 0x522   :  { %v1356_v48 = vrot.slane %v1279_v34, 5  ;;  %v1281_v50 = vpop.f32.mrb[11].mxu0  ;;  %v3212_v51 = vpop.f32.mrb[15].mxu1  ;;  %v1362_v61 = vadd.f32 %v1350_v38, %v4114_v19 }
 0x523   :  { %v1357_v1 = vrot.slane %v1281_v50, 5 }
 0x524   :  { %v1360_v4 = vadd.f32 %v1356_v48, %v4102_v2  ;;  %v1376_v25 = vrot.slane %v1362_v61, 5 }
 0x525   :  { %v1361_v9 = vadd.f32 %v1357_v1, %v4105_v5 }
 0x526   :  { %v3093_v49 = vmul.f32 -1.442695, %v1360_v4 }
 0x527   :  { %v3094_v58 = vmul.f32 -1.442695, %v1361_v9 }
 0x528   :  { %v3692_v10 = vpop.eup %3691  ;;  %3695 = vpow2.f32 %v3093_v49  ;;  %v1383_v49 = vrot.slane %v4256_v7, 7 }
 0x529   :  { %v1195_v37 = vadd.f32 1.0, %v3692_v10  ;;  %v3694_v6 = vpop.eup %3693 }
 0x52a   :  { %v1196_v60 = vadd.f32 1.0, %v3694_v6 }
 0x52b   :  { %3697 = vrcp.f32 %v1195_v37 }
 0x52c   :  { %3699 = vpow2.f32 %v3094_v58 }
 0x532   :  { %v3696_v13 = vpop.eup %3695 }
 0x533   :  { %v1369_v14 = vadd.f32 1.0, %v3696_v13 }
 0x535   :  { %v3698_v59 = vpop.eup %3697  ;;  %3701 = vrcp.f32 %v1369_v14 }
 0x536   :  { %3703 = vrcp.f32 %v1196_v60  ;;  %v1201_v3 = vmul.f32 %v3698_v59, %v1187_v18  ;;  %v3700_v27 = vpop.eup %3699 }
 0x537   :  { %v1370_v39 = vadd.f32 1.0, %v3700_v27 }
 0x538   :  { %v1202_v24 = vadd.f32 %v1201_v3, %v1185_v23 }
 0x53a   :  { %3705 = vtanh.f32 %v1202_v24 }
 0x53b   :  { %3707 = vrcp.f32 %v1370_v39 }
 0x53f   :  { %v3702_v29 = vpop.eup %3701 }
 0x540   :  { %v3704_v32 = vpop.eup %3703  ;;  %v1378_v33 = vmul.f32 %v3702_v29, %v1376_v25 }
 0x541   :  { %v1204_v28 = vsub.f32 1.0, %v3704_v32  ;;  %v1206_v15 = vmul.f32 %v3704_v32, %v4249_v11 }
 0x542   :  { %v1379_v34 = vadd.f32 %v1378_v33, %v4116_v20 }
 0x544   :  { %v3706_v48 = vpop.eup %3705  ;;  %3709 = vtanh.f32 %v1379_v34 }
 0x545   :  { %v1205_v50 = vmul.f32 %v3706_v48, %v1204_v28  ;;  %v3708_v38 = vpop.eup %3707 }
 0x546   :  { %v1381_v4 = vsub.f32 1.0, %v3708_v38  ;;  %v1385_v37 = vmul.f32 %v3708_v38, %v1383_v49 }
 0x547   :  { %v4303_v51 = vadd.f32 %v1206_v15, %v1205_v50 }
 0x549   :  { %v1388_v1 = vrot.slane %v4303_v51, 5  ;;  %1208 = vst.msk [vmem:[#allocation2 + $0x2] sm:$0x1] %vm508_vm5, %v4303_v51 }
 0x54b   :  { %1389 = vrot.lane.b32.xlu1 %v1388_v1, %s3929_s14 }
 0x54e   :  { %v3710_v9 = vpop.eup %3709 }
 0x54f   :  { %v1382_v10 = vmul.f32 %v3710_v9, %v1381_v4 }
 0x551   :  { %v4310_v58 = vadd.f32 %v1385_v37, %v1382_v10 }
 0x553   :  { %v1560_v7 = vrot.slane %v4310_v58, 3 }
 0x5bd   :  { %v1390_v6 = vpop.permute.xlu1 %1389 }
 0x5be   :  { %v1392_v11 = vsel %vm322_vm3, %v4310_v58, %v1390_v6 }
 0x5bf   :  { %v1394_v13 = vrot.slane %v1392_v11, 3 }
 0x5c1   :  { %3095 = vmatmul.mubr.msk.f32.vlgmr.msra.gmra.mrb[12].mxu0 %vm345_vm4, %v1394_v13  ;;  %3096 = vmatmul.mubr.msk.f32.vlgmr.msra.gmra.mrb[16].mxu1 %vm345_vm4, %v1394_v13 }
 0x5c2   :  { %3441 = vmatpush1.bf16.msra.mxu0 %v4122_v40  ;;  %3448 = vmatpush3.bf16.msra.mxu1 %v4124_v41 }
 0x5c3   :  { %3443 = vmatprep.subr.bf16.mxu0 %v4126_v45  ;;  %3449 = vmatprep.subr.bf16.mxu1 %v3932_v56 }
 0x5c4   :  { %1627 = vmatprep.mubr.f32.mxu0 %v3930_v0  ;;  %3221 = vmatprep.mubr.msk.f32.mxu1 %vm3931_vm2, %v3930_v0 }
 0x5c6   :  { %3445 = vmatpush1.bf16.msra.mxu0 %v4134_v52  ;;  %3451 = vmatpush3.bf16.msra.mxu1 %v4136_v57 }
 0x5c7   :  { %3453 = vmatprep.subr.bf16.mxu0 %v4042_v8  ;;  %3469 = vmatprep.subr.bf16.mxu1 %v4044_v12 }
 0x5c9   :  { %3099 = vmatmul.mubr.msk.f32.vlgmr.msra.gmra.mrb[14].mxu0 %vm322_vm3, %v1560_v7  ;;  %3222 = vmatmul.mubr.msk.f32.vlgmr.msra.gmra.mrb[18].mxu1 %vm322_vm3, %v1560_v7 }
 0x5ca   :  { %3455 = vmatpush1.bf16.msra.mxu0 %v4047_v16  ;;  %3471 = vmatpush1.bf16.msra.mxu1 %v4049_v17 }
 0x5cb   :  { %3457 = vmatprep.subr.bf16.mxu0 %v4052_v21  ;;  %3473 = vmatprep.subr.bf16.mxu1 %v4054_v22 }
 0x5cc   :  { %1811 = vmatprep.mubr.f32.mxu0 %v3930_v0  ;;  %1882 = vmatprep.mubr.f32.mxu1 %v3930_v0 }
 0x5ce   :  { %3459 = vmatpush1.bf16.msra.mxu0 %v4058_v26  ;;  %3475 = vmatpush1.bf16.msra.mxu1 %v4062_v30 }
 0x5cf   :  { %3461 = vmatprep.subr.bf16.mxu0 %v4064_v31  ;;  %3477 = vmatprep.subr.bf16.mxu1 %v4066_v35 }
 0x5d2   :  { %3463 = vmatpush1.bf16.msra.mxu0 %v4070_v42  ;;  %3479 = vmatpush1.bf16.msra.mxu1 %v4072_v43 }
 0x5d3   :  { %3465 = vmatprep.subr.bf16.mxu0 %v4076_v46  ;;  %3481 = vmatprep.subr.bf16.mxu1 %v4078_v47 }
 0x5d6   :  { %3467 = vmatpush1.bf16.msra.mxu0 %v4082_v53  ;;  %3483 = vmatpush1.bf16.msra.mxu1 %v4084_v54 }
 0x5d7   :  { %3485 = vmatprep.subr.bf16.mxu0 %v4088_v55  ;;  %3492 = vmatprep.subr.bf16.mxu1 %v3932_v56 }
 0x694   :  { %v1463_v60 = vpop.f32.mrb[12].mxu0  ;;  %v1534_v14 = vpop.f32.mrb[16].mxu1 }
 0x695   :  { %v1464_v18 = vadd.f32 %v1463_v60, %v4174_v62  ;;  %v1465_v59 = vpop.f32.mrb[13].mxu0  ;;  %v1536_v23 = vpop.f32.mrb[17].mxu1  ;;  %v1535_v6 = vadd.f32 %v1534_v14, %v4189_v44 }
 0x696   :  { %v1466_v24 = vadd.f32 %v1465_v59, %v4178_v63  ;;  %v1537_v10 = vadd.f32 %v1536_v23, %v4185_v36 }
 0x697   :  { %v3097_v3 = vmul.f32 -1.442695, %v1464_v18 }
 0x698   :  { %v3098_v27 = vmul.f32 -1.442695, %v1466_v24 }
 0x699   :  { %3711 = vpow2.f32 %v3097_v3 }
 0x69a   :  { %3713 = vpow2.f32 %v3098_v27 }
 0x69c   :  { %v1629_v61 = vpop.f32.mrb[14].mxu0  ;;  %v1700_v39 = vpop.f32.mrb[18].mxu1 }
 0x69d   :  { %v1706_v25 = vrot.slane %v1629_v61, 4  ;;  %v1631_v29 = vpop.f32.mrb[15].mxu0  ;;  %v3223_v32 = vpop.f32.mrb[19].mxu1  ;;  %v1712_v60 = vadd.f32 %v1700_v39, %v4114_v19 }
 0x69e   :  { %v1707_v33 = vrot.slane %v1631_v29, 4 }
 0x69f   :  { %v1710_v34 = vadd.f32 %v1706_v25, %v4102_v2  ;;  %v1726_v59 = vrot.slane %v1712_v60, 4 }
 0x6a0   :  { %v1711_v48 = vadd.f32 %v1707_v33, %v4105_v5 }
 0x6a1   :  { %v3101_v28 = vmul.f32 -1.442695, %v1710_v34 }
 0x6a2   :  { %v3102_v1 = vmul.f32 -1.442695, %v1711_v48 }
 0x6a3   :  { %v3712_v50 = vpop.eup %3711  ;;  %3715 = vpow2.f32 %v3101_v28  ;;  %v1733_v28 = vrot.slane %v4310_v58, 7 }
 0x6a4   :  { %v1545_v15 = vadd.f32 1.0, %v3712_v50  ;;  %v3714_v38 = vpop.eup %3713 }
 0x6a5   :  { %v1546_v49 = vadd.f32 1.0, %v3714_v38 }
 0x6a6   :  { %3717 = vrcp.f32 %v1545_v15 }
 0x6a7   :  { %3719 = vpow2.f32 %v3102_v1 }
 0x6ad   :  { %v3716_v4 = vpop.eup %3715 }
 0x6ae   :  { %v1719_v9 = vadd.f32 1.0, %v3716_v4 }
 0x6b0   :  { %v3718_v37 = vpop.eup %3717  ;;  %3721 = vrcp.f32 %v1719_v9 }
 0x6b1   :  { %3723 = vrcp.f32 %v1546_v49  ;;  %v1551_v11 = vmul.f32 %v3718_v37, %v1537_v10  ;;  %v3720_v7 = vpop.eup %3719 }
 0x6b2   :  { %v1720_v18 = vadd.f32 1.0, %v3720_v7 }
 0x6b3   :  { %v1552_v13 = vadd.f32 %v1551_v11, %v1535_v6 }
 0x6b5   :  { %3725 = vtanh.f32 %v1552_v13 }
 0x6b6   :  { %3727 = vrcp.f32 %v1720_v18 }
 0x6ba   :  { %v3722_v3 = vpop.eup %3721 }
 0x6bb   :  { %v3724_v24 = vpop.eup %3723  ;;  %v1728_v27 = vmul.f32 %v3722_v3, %v1726_v59 }
 0x6bc   :  { %v1554_v23 = vsub.f32 1.0, %v3724_v24  ;;  %v1556_v14 = vmul.f32 %v3724_v24, %v4303_v51 }
 0x6bd   :  { %v1729_v61 = vadd.f32 %v1728_v27, %v4116_v20 }
 0x6bf   :  { %v3726_v25 = vpop.eup %3725  ;;  %3729 = vtanh.f32 %v1729_v61 }
 0x6c0   :  { %v1555_v29 = vmul.f32 %v3726_v25, %v1554_v23  ;;  %v3728_v39 = vpop.eup %3727 }
 0x6c1   :  { %v1731_v34 = vsub.f32 1.0, %v3728_v39  ;;  %v1735_v15 = vmul.f32 %v3728_v39, %v1733_v28 }
 0x6c2   :  { %v4357_v32 = vadd.f32 %v1556_v14, %v1555_v29 }
 0x6c4   :  { %v1738_v33 = vrot.slane %v4357_v32, 4  ;;  %1558 = vst.msk [vmem:[#allocation2 + $0x3] sm:$0x1] %vm508_vm5, %v4357_v32 }
 0x6c6   :  { %1739 = vrot.lane.b32.xlu1 %v1738_v33, %s3929_s14 }
 0x6c9   :  { %v3730_v48 = vpop.eup %3729 }
 0x6ca   :  { %v1732_v50 = vmul.f32 %v3730_v48, %v1731_v34 }
 0x6cc   :  { %v4364_v1 = vadd.f32 %v1735_v15, %v1732_v50 }
 0x6ce   :  { %v1910_v58 = vrot.slane %v4364_v1, 4 }
 0x738   :  { %v1740_v38 = vpop.permute.xlu1 %1739 }
 0x739   :  { %v1742_v51 = vsel %vm322_vm3, %v4364_v1, %v1740_v38 }
 0x73a   :  { %v1744_v4 = vrot.slane %v1742_v51, 4 }
 0x73c   :  { %3103 = vmatmul.mubr.msk.f32.vlgmr.msra.gmra.mrb[16].mxu0 %vm345_vm4, %v1744_v4  ;;  %3104 = vmatmul.mubr.msk.f32.vlgmr.msra.gmra.mrb[20].mxu1 %vm345_vm4, %v1744_v4 }
 0x73d   :  { %3487 = vmatpush1.bf16.msra.mxu0 %v4122_v40  ;;  %3494 = vmatpush3.bf16.msra.mxu1 %v4124_v41 }
 0x73e   :  { %3489 = vmatprep.subr.bf16.mxu0 %v4126_v45  ;;  %3495 = vmatprep.subr.bf16.mxu1 %v3932_v56 }
 0x73f   :  { %1977 = vmatprep.mubr.f32.mxu0 %v3930_v0  ;;  %3232 = vmatprep.mubr.msk.f32.mxu1 %vm3931_vm2, %v3930_v0 }
 0x741   :  { %3491 = vmatpush1.bf16.msra.mxu0 %v4134_v52  ;;  %3497 = vmatpush3.bf16.msra.mxu1 %v4136_v57 }
 0x742   :  { %3499 = vmatprep.subr.bf16.mxu0 %v4042_v8  ;;  %3515 = vmatprep.subr.bf16.mxu1 %v4044_v12 }
 0x744   :  { %3107 = vmatmul.mubr.msk.f32.vlgmr.msra.gmra.mrb[18].mxu0 %vm322_vm3, %v1910_v58  ;;  %3233 = vmatmul.mubr.msk.f32.vlgmr.msra.gmra.mrb[22].mxu1 %vm322_vm3, %v1910_v58 }
 0x745   :  { %3501 = vmatpush1.bf16.msra.mxu0 %v4047_v16  ;;  %3517 = vmatpush1.bf16.msra.mxu1 %v4049_v17 }
 0x746   :  { %3503 = vmatprep.subr.bf16.mxu0 %v4052_v21  ;;  %3519 = vmatprep.subr.bf16.mxu1 %v4054_v22 }
 0x747   :  { %2161 = vmatprep.mubr.f32.mxu0 %v3930_v0  ;;  %2232 = vmatprep.mubr.f32.mxu1 %v3930_v0 }
 0x749   :  { %3505 = vmatpush1.bf16.msra.mxu0 %v4058_v26  ;;  %3521 = vmatpush1.bf16.msra.mxu1 %v4062_v30 }
 0x74a   :  { %3507 = vmatprep.subr.bf16.mxu0 %v4064_v31  ;;  %3523 = vmatprep.subr.bf16.mxu1 %v4066_v35 }
 0x74d   :  { %3509 = vmatpush1.bf16.msra.mxu0 %v4070_v42  ;;  %3525 = vmatpush1.bf16.msra.mxu1 %v4072_v43 }
 0x74e   :  { %3511 = vmatprep.subr.bf16.mxu0 %v4076_v46  ;;  %3527 = vmatprep.subr.bf16.mxu1 %v4078_v47 }
 0x751   :  { %3513 = vmatpush1.bf16.msra.mxu0 %v4082_v53  ;;  %3529 = vmatpush1.bf16.msra.mxu1 %v4084_v54 }
 0x752   :  { %3531 = vmatprep.subr.bf16.mxu0 %v4088_v55  ;;  %3538 = vmatprep.subr.bf16.mxu1 %v3932_v56 }
 0x80f   :  { %v1813_v49 = vpop.f32.mrb[16].mxu0  ;;  %v1884_v9 = vpop.f32.mrb[20].mxu1 }
 0x810   :  { %v1814_v10 = vadd.f32 %v1813_v49, %v4174_v62  ;;  %v1815_v37 = vpop.f32.mrb[17].mxu0  ;;  %v1886_v6 = vpop.f32.mrb[21].mxu1  ;;  %v1885_v38 = vadd.f32 %v1884_v9, %v4189_v44 }
 0x811   :  { %v1816_v13 = vadd.f32 %v1815_v37, %v4178_v63  ;;  %v1887_v50 = vadd.f32 %v1886_v6, %v4185_v36 }
 0x812   :  { %v3105_v11 = vmul.f32 -1.442695, %v1814_v10 }
 0x813   :  { %v3106_v7 = vmul.f32 -1.442695, %v1816_v13 }
 0x814   :  { %3731 = vpow2.f32 %v3105_v11 }
 0x815   :  { %3733 = vpow2.f32 %v3106_v7 }
 0x817   :  { %v1979_v60 = vpop.f32.mrb[18].mxu0  ;;  %v2050_v18 = vpop.f32.mrb[22].mxu1 }
 0x818   :  { %v2056_v59 = vrot.slane %v1979_v60, 3  ;;  %v1981_v3 = vpop.f32.mrb[19].mxu0  ;;  %v3234_v24 = vpop.f32.mrb[23].mxu1  ;;  %v2062_v49 = vadd.f32 %v2050_v18, %v4114_v19 }
 0x819   :  { %v2057_v27 = vrot.slane %v1981_v3, 3 }
 0x81a   :  { %v2060_v61 = vadd.f32 %v2056_v59, %v4102_v2  ;;  %v2076_v37 = vrot.slane %v2062_v49, 3 }
 0x81b   :  { %v2061_v25 = vadd.f32 %v2057_v27, %v4105_v5 }
 0x81c   :  { %v3109_v23 = vmul.f32 -1.442695, %v2060_v61  ;;  %v2083_v61 = vrot.slane %v4364_v1, 7 }
 0x81d   :  { %v3110_v33 = vmul.f32 -1.442695, %v2061_v25 }
 0x81e   :  { %v3732_v29 = vpop.eup %3731  ;;  %3735 = vpow2.f32 %v3109_v23 }
 0x81f   :  { %v1895_v14 = vadd.f32 1.0, %v3732_v29  ;;  %v3734_v39 = vpop.eup %3733 }
 0x820   :  { %v1896_v28 = vadd.f32 1.0, %v3734_v39 }
 0x821   :  { %3737 = vrcp.f32 %v1895_v14 }
 0x822   :  { %3739 = vpow2.f32 %v3110_v33 }
 0x828   :  { %v3736_v34 = vpop.eup %3735 }
 0x829   :  { %v2069_v48 = vadd.f32 1.0, %v3736_v34 }
 0x82b   :  { %v3738_v15 = vpop.eup %3737  ;;  %3741 = vrcp.f32 %v2069_v48 }
 0x82c   :  { %3743 = vrcp.f32 %v1896_v28  ;;  %v1901_v51 = vmul.f32 %v3738_v15, %v1887_v50  ;;  %v3740_v58 = vpop.eup %3739 }
 0x82d   :  { %v2070_v10 = vadd.f32 1.0, %v3740_v58 }
 0x82e   :  { %v1902_v4 = vadd.f32 %v1901_v51, %v1885_v38 }
 0x830   :  { %3745 = vtanh.f32 %v1902_v4 }
 0x831   :  { %3747 = vrcp.f32 %v2070_v10 }
 0x835   :  { %v3742_v11 = vpop.eup %3741 }
 0x836   :  { %v3744_v13 = vpop.eup %3743  ;;  %v2078_v7 = vmul.f32 %v3742_v11, %v2076_v37 }
 0x837   :  { %v1904_v6 = vsub.f32 1.0, %v3744_v13  ;;  %v1906_v9 = vmul.f32 %v3744_v13, %v4357_v32 }
 0x838   :  { %v2079_v60 = vadd.f32 %v2078_v7, %v4116_v20 }
 0x83a   :  { %v3746_v59 = vpop.eup %3745  ;;  %3749 = vtanh.f32 %v2079_v60 }
 0x83b   :  { %v1905_v3 = vmul.f32 %v3746_v59, %v1904_v6  ;;  %v3748_v19 = vpop.eup %3747 }
 0x83c   :  { %v2081_v18 = vsub.f32 1.0, %v3748_v19  ;;  %v2085_v29 = vmul.f32 %v3748_v19, %v2083_v61 }
 0x83d   :  { %v4411_v24 = vadd.f32 %v1906_v9, %v1905_v3 }
 0x83f   :  { %v2088_v27 = vrot.slane %v4411_v24, 3  ;;  %1908 = vst.msk [vmem:[#allocation2 + $0x4] sm:$0x1] %vm508_vm5, %v4411_v24 }
 0x841   :  { %2089 = vrot.lane.b32.xlu0 %v2088_v27, %s3929_s14 }
 0x844   :  { %v3750_v23 = vpop.eup %3749 }
 0x845   :  { %v2082_v25 = vmul.f32 %v3750_v23, %v2081_v18 }
 0x847   :  { %v4418_v14 = vadd.f32 %v2085_v29, %v2082_v25 }
 0x849   :  { %v2260_v1 = vrot.slane %v4418_v14, 5 }
 0x8b3   :  { %v2090_v33 = vpop.permute.xlu0 %2089 }
 0x8b4   :  { %v2092_v32 = vsel %vm322_vm3, %v4418_v14, %v2090_v33 }
 0x8b5   :  { %v2094_v39 = vrot.slane %v2092_v32, 5 }
 0x8b7   :  { %3111 = vmatmul.mubr.msk.f32.vlgmr.msra.gmra.mrb[20].mxu0 %vm345_vm4, %v2094_v39  ;;  %3112 = vmatmul.mubr.msk.f32.vlgmr.msra.gmra.mrb[24].mxu1 %vm345_vm4, %v2094_v39  ;;  %v4465_v39 = vld [vmem:[%s4569_s4] sm:$0x1] }
 0x8b8   :  { %3533 = vmatpush1.bf16.msra.mxu0 %v4122_v40  ;;  %3540 = vmatpush3.bf16.msra.mxu1 %v4124_v41 }
 0x8b9   :  { %3535 = vmatprep.subr.bf16.mxu0 %v4126_v45  ;;  %3541 = vmatprep.subr.bf16.mxu1 %v3932_v56 }
 0x8ba   :  { %2327 = vmatprep.mubr.f32.mxu0 %v3930_v0  ;;  %3243 = vmatprep.mubr.msk.f32.mxu1 %vm3931_vm2, %v3930_v0 }
 0x8bc   :  { %3537 = vmatpush1.bf16.msra.mxu0 %v4134_v52  ;;  %3543 = vmatpush3.bf16.msra.mxu1 %v4136_v57 }
 0x8bd   :  { %3545 = vmatprep.subr.bf16.mxu0 %v4042_v8  ;;  %3561 = vmatprep.subr.bf16.mxu1 %v4044_v12 }
 0x8bf   :  { %3115 = vmatmul.mubr.msk.f32.vlgmr.msra.gmra.mrb[22].mxu0 %vm322_vm3, %v2260_v1  ;;  %3244 = vmatmul.mubr.msk.f32.vlgmr.msra.gmra.mrb[26].mxu1 %vm322_vm3, %v2260_v1 }
 0x8c0   :  { %3547 = vmatpush1.bf16.msra.mxu0 %v4047_v16  ;;  %3563 = vmatpush1.bf16.msra.mxu1 %v4049_v17 }
 0x8c1   :  { %3549 = vmatprep.subr.bf16.mxu0 %v4052_v21  ;;  %3565 = vmatprep.subr.bf16.mxu1 %v4054_v22 }
 0x8c2   :  { %2511 = vmatprep.mubr.f32.mxu0 %v3930_v0  ;;  %2582 = vmatprep.mubr.f32.mxu1 %v3930_v0 }
 0x8c4   :  { %3551 = vmatpush1.bf16.msra.mxu0 %v4058_v26  ;;  %3567 = vmatpush1.bf16.msra.mxu1 %v4062_v30 }
 0x8c5   :  { %3553 = vmatprep.subr.bf16.mxu0 %v4064_v31  ;;  %3569 = vmatprep.subr.bf16.mxu1 %v4066_v35 }
 0x8c8   :  { %3555 = vmatpush1.bf16.msra.mxu0 %v4070_v42  ;;  %3571 = vmatpush1.bf16.msra.mxu1 %v4072_v43 }
 0x8c9   :  { %3557 = vmatprep.subr.bf16.mxu0 %v4076_v46  ;;  %3573 = vmatprep.subr.bf16.mxu1 %v4078_v47 }
 0x8cc   :  { %3559 = vmatpush1.bf16.msra.mxu0 %v4082_v53  ;;  %3575 = vmatpush1.bf16.msra.mxu1 %v4084_v54 }
 0x8cd   :  { %3577 = vmatprep.subr.bf16.mxu0 %v4088_v55  ;;  %3584 = vmatprep.subr.bf16.mxu1 %v3932_v56 }
 0x98a   :  { %v2163_v34 = vpop.f32.mrb[20].mxu0  ;;  %v2234_v28 = vpop.f32.mrb[24].mxu1 }
 0x98b   :  { %v2164_v48 = vadd.f32 %v2163_v34, %v4174_v62  ;;  %v2165_v50 = vpop.f32.mrb[21].mxu0  ;;  %v2236_v15 = vpop.f32.mrb[25].mxu1  ;;  %v2235_v25 = vadd.f32 %v2234_v28, %v4189_v44 }
 0x98c   :  { %v2166_v51 = vadd.f32 %v2165_v50, %v4178_v63  ;;  %v2237_v61 = vadd.f32 %v2236_v15, %v4185_v36 }
 0x98d   :  { %v3113_v38 = vmul.f32 -1.442695, %v2164_v48 }
 0x98e   :  { %v3114_v4 = vmul.f32 -1.442695, %v2166_v51 }
 0x98f   :  { %3751 = vpow2.f32 %v3113_v38 }
 0x990   :  { %3753 = vpow2.f32 %v3114_v4 }
 0x992   :  { %v2329_v58 = vpop.f32.mrb[22].mxu0  ;;  %v2400_v49 = vpop.f32.mrb[26].mxu1 }
 0x993   :  { %v2406_v10 = vrot.slane %v2329_v58, 2  ;;  %v2331_v37 = vpop.f32.mrb[23].mxu0  ;;  %v3245_v11 = vpop.f32.mrb[27].mxu1  ;;  %v2412_v1 = vadd.f32 %v4465_v39, %v2400_v49 }
 0x994   :  { %v2407_v13 = vrot.slane %v2331_v37, 2 }
 0x995   :  { %v2410_v55 = vadd.f32 %v2406_v10, %v4102_v2  ;;  %v2426_v48 = vrot.slane %v2412_v1, 2 }
 0x996   :  { %v2411_v60 = vadd.f32 %v2407_v13, %v4105_v5 }
 0x997   :  { %v3117_v7 = vmul.f32 -1.442695, %v2410_v55  ;;  %v2433_v55 = vrot.slane %v4418_v14, 7 }
 0x998   :  { %v3118_v3 = vmul.f32 -1.442695, %v2411_v60 }
 0x999   :  { %v3752_v6 = vpop.eup %3751  ;;  %3755 = vpow2.f32 %v3117_v7 }
 0x99a   :  { %v2245_v59 = vadd.f32 1.0, %v3752_v6  ;;  %v3754_v9 = vpop.eup %3753 }
 0x99b   :  { %v2246_v19 = vadd.f32 1.0, %v3754_v9 }
 0x99c   :  { %3757 = vrcp.f32 %v2245_v59 }
 0x99d   :  { %3759 = vpow2.f32 %v3118_v3 }
 0x9a3   :  { %v3756_v27 = vpop.eup %3755 }
 0x9a4   :  { %v2419_v18 = vadd.f32 1.0, %v3756_v27 }
 0x9a6   :  { %v3758_v23 = vpop.eup %3757  ;;  %3761 = vrcp.f32 %v2419_v18 }
 0x9a7   :  { %3763 = vrcp.f32 %v2246_v19  ;;  %v2251_v29 = vmul.f32 %v3758_v23, %v2237_v61  ;;  %v3760_v32 = vpop.eup %3759 }
 0x9a8   :  { %v2420_v34 = vadd.f32 1.0, %v3760_v32 }
 0x9a9   :  { %v2252_v33 = vadd.f32 %v2251_v29, %v2235_v25 }
 0x9ab   :  { %3765 = vtanh.f32 %v2252_v33 }
 0x9ac   :  { %3767 = vrcp.f32 %v2420_v34 }
 0x9b0   :  { %v3762_v50 = vpop.eup %3761 }
 0x9b1   :  { %v3764_v15 = vpop.eup %3763  ;;  %v2428_v38 = vmul.f32 %v3762_v50, %v2426_v48 }
 0x9b2   :  { %v2254_v51 = vsub.f32 1.0, %v3764_v15  ;;  %v2256_v10 = vmul.f32 %v3764_v15, %v4411_v24 }
 0x9b3   :  { %v2429_v28 = vadd.f32 %v2428_v38, %v4116_v20 }
 0x9b5   :  { %v3766_v4 = vpop.eup %3765  ;;  %3769 = vtanh.f32 %v2429_v28 }
 0x9b6   :  { %v2255_v58 = vmul.f32 %v3766_v4, %v2254_v51  ;;  %v3768_v49 = vpop.eup %3767 }
 0x9b7   :  { %v2431_v13 = vsub.f32 1.0, %v3768_v49  ;;  %v2435_v6 = vmul.f32 %v3768_v49, %v2433_v55 }
 0x9b8   :  { %v4470_v37 = vadd.f32 %v2256_v10, %v2255_v58 }
 0x9ba   :  { %v2438_v11 = vrot.slane %v4470_v37, 2  ;;  %2258 = vst.msk [vmem:[#allocation2 + $0x5] sm:$0x1] %vm508_vm5, %v4470_v37 }
 0x9bc   :  { %2439 = vrot.lane.b32.xlu1 %v2438_v11, %s3929_s14 }
 0x9bf   :  { %v3770_v7 = vpop.eup %3769 }
 0x9c0   :  { %v2432_v60 = vmul.f32 %v3770_v7, %v2431_v13 }
 0x9c2   :  { %v4477_v59 = vadd.f32 %v2435_v6, %v2432_v60 }
 0x9c4   :  { %v2610_v14 = vrot.slane %v4477_v59, 6  ;;  %v2783_v49 = vrot.slane %v4477_v59, 7 }
 0xa2e   :  { %v2440_v3 = vpop.permute.xlu1 %2439 }
 0xa2f   :  { %v2442_v24 = vsel %vm322_vm3, %v4477_v59, %v2440_v3  ;;  %v2961_v59 = vld [vmem:[%s4572_s7 + $0x8] sm:$0xff] }
 0xa30   :  { %v2444_v9 = vrot.slane %v2442_v24, 6 }
 0xa32   :  { %3119 = vmatmul.mubr.msk.f32.vlgmr.msra.gmra.mrb[24].mxu0 %vm345_vm4, %v2444_v9  ;;  %3120 = vmatmul.mubr.msk.f32.vlgmr.msra.gmra.mrb[28].mxu1 %vm345_vm4, %v2444_v9  ;;  %v2962_v9 = vld [vmem:[%s4572_s7 + $0x10] sm:$0xff] }
 0xa33   :  { %3579 = vmatpush1.bf16.msra.mxu0 %v4122_v40  ;;  %3586 = vmatpush3.bf16.msra.mxu1 %v4124_v41 }
 0xa34   :  { %3581 = vmatprep.subr.bf16.mxu0 %v4126_v45  ;;  %3587 = vmatprep.subr.bf16.mxu1 %v3932_v56 }
 0xa35   :  { %2677 = vmatprep.mubr.f32.mxu0 %v3930_v0  ;;  %3254 = vmatprep.mubr.msk.f32.mxu1 %vm3931_vm2, %v3930_v0 }
 0xa37   :  { %3583 = vmatpush1.bf16.msra.mxu0 %v4134_v52  ;;  %3589 = vmatpush3.bf16.msra.mxu1 %v4136_v57 }
 0xa38   :  { %3591 = vmatprep.subr.bf16.mxu0 %v4042_v8  ;;  %3607 = vmatprep.subr.bf16.mxu1 %v4044_v12 }
 0xa3a   :  { %3123 = vmatmul.mubr.msk.f32.vlgmr.msra.gmra.mrb[26].mxu0 %vm322_vm3, %v2610_v14  ;;  %3255 = vmatmul.mubr.msk.f32.vlgmr.msra.gmra.mrb[30].mxu1 %vm322_vm3, %v2610_v14  ;;  %v2963_v14 = vld [vmem:[%s4572_s7 + $0x18] sm:$0xff] }
 0xa3b   :  { %3593 = vmatpush1.bf16.msra.mxu0 %v4047_v16  ;;  %3609 = vmatpush1.bf16.msra.mxu1 %v4049_v17 }
 0xa3c   :  { %3595 = vmatprep.subr.bf16.mxu0 %v4052_v21  ;;  %3611 = vmatprep.subr.bf16.mxu1 %v4054_v22 }
 0xa3d   :  { %2861 = vmatprep.mubr.f32.mxu0 %v3930_v0  ;;  %2932 = vmatprep.mubr.f32.mxu1 %v3930_v0 }
 0xa3f   :  { %3597 = vmatpush1.bf16.msra.mxu0 %v4058_v26  ;;  %3613 = vmatpush1.bf16.msra.mxu1 %v4062_v30 }
 0xa40   :  { %3599 = vmatprep.subr.bf16.mxu0 %v4064_v31  ;;  %3615 = vmatprep.subr.bf16.mxu1 %v4066_v35 }
 0xa43   :  { %3601 = vmatpush1.bf16.msra.mxu0 %v4070_v42  ;;  %3617 = vmatpush1.bf16.msra.mxu1 %v4072_v43 }
 0xa44   :  { %3603 = vmatprep.subr.bf16.mxu0 %v4076_v46  ;;  %3619 = vmatprep.subr.bf16.mxu1 %v4078_v47 }
 0xa47   :  { %3605 = vmatpush1.bf16.msra.mxu0 %v4082_v53  ;;  %3621 = vmatpush1.bf16.msra.mxu1 %v4084_v54 }
 0xa48   :  { %3622 = vmatprep.subr.bf16.mxu0 %v3932_v56 }
 0xb05   :  { %v2513_v8 = vpop.f32.mrb[24].mxu0  ;;  %v2584_v12 = vpop.f32.mrb[28].mxu1 }
 0xb06   :  { %v2514_v16 = vadd.f32 %v2513_v8, %v4174_v62  ;;  %v2515_v17 = vpop.f32.mrb[25].mxu0  ;;  %v2586_v21 = vpop.f32.mrb[29].mxu1  ;;  %v3626_v8 = vpack.c.bf16 %v2963_v14, %v2962_v9 }
 0xb07   :  { %v2516_v26 = vadd.f32 %v2515_v17, %v4178_v63  ;;  %v2587_v61 = vadd.f32 %v2586_v21, %v4185_v36 }
 0xb08   :  { %v3121_v22 = vmul.f32 -1.442695, %v2514_v16 }
 0xb09   :  { %v3122_v30 = vmul.f32 -1.442695, %v2516_v26 }
 0xb0a   :  { %3771 = vpow2.f32 %v3121_v22 }
 0xb0b   :  { %3773 = vpow2.f32 %v3122_v30 }
 0xb0d   :  { %v2679_v31 = vpop.f32.mrb[26].mxu0  ;;  %v2750_v35 = vpop.f32.mrb[30].mxu1 }
 0xb0e   :  { %v2756_v42 = vrot.slane %v2679_v31, 1  ;;  %v2681_v43 = vpop.f32.mrb[27].mxu0  ;;  %v3256_v46 = vpop.f32.mrb[31].mxu1  ;;  %v2762_v33 = vadd.f32 %v4465_v39, %v2750_v35 }
 0xb0f   :  { %v2757_v47 = vrot.slane %v2681_v43, 1 }
 0xb10   :  { %v2760_v53 = vadd.f32 %v2756_v42, %v4102_v2  ;;  %v2585_v2 = vadd.f32 %v2584_v12, %v4189_v44  ;;  %v2776_v1 = vrot.slane %v2762_v33, 1 }
 0xb11   :  { %v2761_v40 = vadd.f32 %v2757_v47, %v4105_v5 }
 0xb12   :  { %v3125_v54 = vmul.f32 -1.442695, %v2760_v53 }
 0xb13   :  { %v3126_v52 = vmul.f32 -1.442695, %v2761_v40 }
 0xb14   :  { %v3772_v41 = vpop.eup %3771  ;;  %3775 = vpow2.f32 %v3125_v54 }
 0xb15   :  { %v2595_v45 = vadd.f32 1.0, %v3772_v41  ;;  %v3774_v57 = vpop.eup %3773 }
 0xb16   :  { %v2596_v19 = vadd.f32 1.0, %v3774_v57 }
 0xb17   :  { %3777 = vrcp.f32 %v2595_v45 }
 0xb18   :  { %3779 = vpow2.f32 %v3126_v52 }
 0xb1e   :  { %v3776_v27 = vpop.eup %3775 }
 0xb1f   :  { %v2769_v18 = vadd.f32 1.0, %v3776_v27 }
 0xb21   :  { %v3778_v23 = vpop.eup %3777  ;;  %3781 = vrcp.f32 %v2769_v18 }
 0xb22   :  { %3783 = vrcp.f32 %v2596_v19  ;;  %v2601_v25 = vmul.f32 %v3778_v23, %v2587_v61  ;;  %v3780_v5 = vpop.eup %3779 }
 0xb23   :  { %v2770_v32 = vadd.f32 1.0, %v3780_v5 }
 0xb24   :  { %v2602_v29 = vadd.f32 %v2601_v25, %v2585_v2 }
 0xb26   :  { %3785 = vtanh.f32 %v2602_v29 }
 0xb27   :  { %3787 = vrcp.f32 %v2770_v32 }
 0xb2b   :  { %v3782_v34 = vpop.eup %3781 }
 0xb2c   :  { %v3784_v48 = vpop.eup %3783  ;;  %v2778_v50 = vmul.f32 %v3782_v34, %v2776_v1 }
 0xb2d   :  { %v2604_v38 = vsub.f32 1.0, %v3784_v48  ;;  %v2606_v4 = vmul.f32 %v3784_v48, %v4470_v37  ;;  %v2960_v37 = vld [vmem:[%s4572_s7] sm:$0xff] }
 0xb2e   :  { %v2779_v15 = vadd.f32 %v2778_v50, %v4116_v20  ;;  %v3623_v24 = vpack.c.bf16 %v2961_v59, %v2960_v37 }
 0xb30   :  { %v3786_v28 = vpop.eup %3785  ;;  %3789 = vtanh.f32 %v2779_v15 }
 0xb31   :  { %v2605_v51 = vmul.f32 %v3786_v28, %v2604_v38  ;;  %v3788_v11 = vpop.eup %3787 }
 0xb32   :  { %v2781_v39 = vsub.f32 1.0, %v3788_v11  ;;  %v2785_v7 = vmul.f32 %v3788_v11, %v2783_v49 }
 0xb33   :  { %v2607_v58 = vadd.f32 %v2606_v4, %v2605_v51 }
 0xb35   :  { %v2788_v10 = vrot.slane %v2607_v58, 1  ;;  %2608 = vst.msk [vmem:[#allocation2 + $0x6] sm:$0x1] %vm508_vm5, %v2607_v58 }
 0xb37   :  { %2789 = vrot.lane.b32.xlu0 %v2788_v10, %s3929_s14 }
 0xb3a   :  { %v3790_v13 = vpop.eup %3789 }
 0xb3b   :  { %v2782_v55 = vmul.f32 %v3790_v13, %v2781_v39 }
 0xb3d   :  { %v2786_v20 = vadd.f32 %v2785_v7, %v2782_v55 }
 0xba9   :  { %v2790_v60 = vpop.permute.xlu0 %2789 }
 0xbaa   :  { %v2792_v6 = vsel %vm322_vm3, %v2786_v20, %v2790_v60 }
 0xbab   :  { %v2794_v3 = vrot.slane %v2792_v6, 7 }
 0xbad   :  { %3127 = vmatmul.mubr.msk.f32.vlgmr.msra.gmra.mrb[28].mxu0 %vm345_vm4, %v2794_v3  ;;  %3128 = vmatmul.mubr.msk.f32.vlgmr.msra.gmra.mrb[32].mxu1 %vm345_vm4, %v2794_v3 }
 0xbae   :  { %3265 = vmatprep.mubr.msk.f32.mxu0 %vm3931_vm2, %v3930_v0  ;;  %3624 = vmatpush3.bf16.msra.mxu0 %v3623_v24 }
 0xbaf   :  { %3625 = vmatprep.subr.bf16.mxu0 %v3932_v56 }
 0xbb2   :  { %3627 = vmatpush3.bf16.msra.mxu0 %v3626_v8 }
 0xc80   :  { %v2863_v0 = vpop.f32.mrb[28].mxu0  ;;  %v2934_v12 = vpop.f32.mrb[32].mxu1 }
 0xc81   :  { %v2864_v16 = vadd.f32 %v2863_v0, %v4174_v62  ;;  %v2865_v17 = vpop.f32.mrb[29].mxu0  ;;  %v2936_v21 = vpop.f32.mrb[33].mxu1  ;;  %v2935_v47 = vadd.f32 %v2934_v12, %v4189_v44 }
 0xc82   :  { %v2866_v26 = vadd.f32 %v2865_v17, %v4178_v63  ;;  %v2937_v56 = vadd.f32 %v2936_v21, %v4185_v36  ;;  %v3131_v36 = vld [vmem:[%s4573_s8] ss:$0 sm:$0xff] }
 0xc83   :  { %v3129_v22 = vmul.f32 -1.442695, %v2864_v16 }
 0xc84   :  { %v3130_v30 = vmul.f32 -1.442695, %v2866_v26 }
 0xc85   :  { %3791 = vpow2.f32 %v3129_v22 }
 0xc86   :  { %3793 = vpow2.f32 %v3130_v30 }
 0xc8f   :  { %v3792_v31 = vpop.eup %3791 }
 0xc90   :  { %v2945_v35 = vadd.f32 1.0, %v3792_v31  ;;  %v3794_v42 = vpop.eup %3793 }
 0xc91   :  { %v2946_v43 = vadd.f32 1.0, %v3794_v42 }
 0xc92   :  { %3795 = vrcp.f32 %v2945_v35 }
 0xc93   :  { %3797 = vrcp.f32 %v2946_v43 }
 0xc9c   :  { %v3796_v46 = vpop.eup %3795 }
 0xc9d   :  { %v2951_v62 = vmul.f32 %v3796_v46, %v2937_v56  ;;  %v3798_v54 = vpop.eup %3797 }
 0xc9e   :  { %v2954_v40 = vsub.f32 1.0, %v3798_v54  ;;  %v2956_v41 = vmul.f32 %v3798_v54, %v2607_v58 }
 0xc9f   :  { %v2952_v53 = vadd.f32 %v2951_v62, %v2935_v47 }
 0xca1   :  { %3799 = vtanh.f32 %v2952_v53 }
 0xcab   :  { %v3800_v63 = vpop.eup %3799 }
 0xcac   :  { %v2955_v45 = vmul.f32 %v3800_v63, %v2954_v40 }
 0xcae   :  { %v2957_v52 = vadd.f32 %v2956_v41, %v2955_v45 }
 0xcb0   :  { %2958 = vst.msk [vmem:[#allocation2 + $0x7] sm:$0x1] %vm508_vm5, %v2957_v52 }
 0xcb7   :  { %v2959_v57 = vld [vmem:[#allocation2] sm:$0xff] }
 0xcb8   :  { %3266 = vmatmul.mubr.msk.f32.vlgmr.msra.gmra.mrb[30].mxu0 %vm322_vm3, %v2959_v57 }
 0xd8b   :  { %v3040_v44 = vpop.f32.mrb[30].mxu0 }
 0xd8c   :  { %v3041_v27 = vadd.f32 %v3131_v36, %v3040_v44  ;;  %v3267_v19 = vpop.f32.mrb[31].mxu0 }
 0xd8e   :  { %v3044_v18 = vmul.f32 1.442695, %v3041_v27 }
 0xd90   :  { %3801 = vpow2.f32 %v3044_v18 }
 0xd9a   :  { %v3802_v61 = vpop.eup %3801 }
 0xd9b   :  { %3046 = vst [vmem:[#allocation11] sm:$0xff] %v3802_v61 }
 0xd9c   :  { %3903 = shalt.err (!%p3900_p8)
}
 0xd9d   :  { %s3904_s8 = scalar_lea.hbm %s4574_s9, 128 }
 0xd9e   :  { %p3905_p9 = scmp.ne.s32.totalorder %s4574_s9, %s3904_s8  ;;  %p3908_p10 = scmp.lt.u32.totalorder %s3904_s8, %s4574_s9 }
 0xda0   :  { %p3910_p11 = pnand %p3908_p10, %p3905_p9 }
 0xda2   :  { %3913 = shalt.err (!%p3910_p11)
}
 0xda3   :  { %3056 = dma.vmem_to_hbm [thread:$0]  %s3054_s29, 128, %s4574_s9, [#allocation5]  }
 0xda4   :  { %3920 = dma.done.wait [#allocation5], 128  }
 0xda5   :  { %3921 = vsyncadd [#allocation5], 4294967168 }
 0xda6   :  { %3060 = vsyncpa [#allocation4], 1 }
 0xda7   :  { %3061 = vsyncpa [#allocation7], 1 }
 0xda8   :  { %3062 = vsyncpa [#allocation10], 1 }
 0xda9   :  { %3063 = vsyncpa [#allocation5], 1 }

</bundles_post_ra>
